<compile_context>
chip_gen: v7x
topology: tpu7x:2x2x1
jax: 0.10.0
libtpu: 0.0.40
codegen_flags: <defaults>
</compile_context>

<pallas_src>
import numpy as np

import jax
import jax.numpy as jnp
from jax import lax
from jax.experimental import pallas as pl
from jax.experimental.pallas import tpu as pltpu


NUM_CLASSES = 10
_PAD_CLASSES = 128  # lane-dense fc2 output slab (sliced back to NUM_CLASSES)

_BLOCKS = [(1, 32, 2), (32, 64, 1), (64, 128, 1), (128, 256, 1)]


# ----------------------------------------------------------------------------
# Compile-time constants (built with numpy at trace time)
# ----------------------------------------------------------------------------
def _dw_boundary_mask(n, h, w):
    """(n*h*w, 9) 0/1 mask: is tap k=(kh*3+kw) of a 3x3/pad=1 conv in-bounds."""
    m = np.zeros((n * h * w, 9), np.float32)
    for nn in range(n):
        for hh in range(h):
            for ww in range(w):
                r = (nn * h + hh) * w + ww
                for kh in range(3):
                    for kw in range(3):
                        if 0 <= hh + kh - 1 < h and 0 <= ww + kw - 1 < w:
                            m[r, kh * 3 + kw] = 1.0
    return m


def _pool_select(n, h, w):
    """(n*(h/2)*(w/2), n*h*w) 0/1 matrix picking each 2x2 window's origin row."""
    ho, wo = h // 2, w // 2
    s = np.zeros((n * ho * wo, n * h * w), np.float32)
    for nn in range(n):
        for a in range(ho):
            for b in range(wo):
                s[(nn * ho + a) * wo + b, (nn * h + 2 * a) * w + 2 * b] = 1.0
    return s


# ----------------------------------------------------------------------------
# Fused Pallas kernel
# ----------------------------------------------------------------------------
def _dw3x3(x, mw_ref, w, axis):
    """Depthwise 3x3 (stride 1, pad 1): 9 rolls along `axis` (XLU) times the
    precomputed masked per-tap weights (one full-width vmul each), accumulated
    as 3 partial sums of 3 (tree) so adds can overlap the rolls."""
    m = x.shape[axis]
    parts = []
    for kh in range(3):
        part = None
        for kw in range(3):
            k = kh * 3 + kw
            off = (kh - 1) * w + (kw - 1)
            xs = x if off == 0 else pltpu.roll(x, shift=(-off) % m, axis=axis)
            term = xs * mw_ref[k]
            part = term if part is None else part + term
        parts.append(part)
    return (parts[0] + parts[1]) + parts[2]


def _mobilenet_fused_kernel(
    # block 0 (dw 3x3 stride 2 via im2col patches, then pw 1->32); transposed layout
    patches0_ref, dw0_w_ref, dw0_b_ref, pw0_w_ref, pw0_b_ref,
    # block 1 (transposed (cin, m) layout): masked dw weights, dw bias, pw w/b, pool sel
    mw1_ref, dw1_b_ref, pw1_w_ref, pw1_b_ref, sel1_ref,
    # blocks 2..3 ((m, cin) layout)
    mw2_ref, dw2_b_ref, pw2_w_ref, pw2_b_ref, sel2_ref,
    mw3_ref, dw3_b_ref, pw3_w_ref, pw3_b_ref, sel3_ref,
    # classifier
    fc1_w_ref, fc1_b_ref, fc2_w_ref, fc2_b_ref,
    # output
    out_ref,
):
    f32 = jnp.float32
    bf16 = jnp.bfloat16

    # ---- block 0: dw 3x3 /2 + ReLU (via im2col patches), pw 1->32 + ReLU ----
    # Transposed layout: channels in sublanes, flattened (n,h,w) pixels in lanes.
    p0 = patches0_ref[...]                                            # (9, m1)
    h0 = jnp.sum(p0 * dw0_w_ref[...], axis=0, keepdims=True) + dw0_b_ref[...]
    h0 = jnp.maximum(h0, 0.0)                                         # (1, m1)
    x_t = jnp.maximum(pw0_w_ref[...] * h0 + pw0_b_ref[...], 0.0)      # (32, m1)

    # ---- block 1 (lane-dense transposed): dw + ReLU + pw + ReLU + maxpool ----
    m1 = x_t.shape[1]
    acc_t = jnp.maximum(_dw3x3(x_t, mw1_ref, w=8, axis=1) + dw1_b_ref[...], 0.0)
    y_t = jnp.dot(pw1_w_ref[...], acc_t.astype(bf16), preferred_element_type=f32)
    y_t = jnp.maximum(y_t + pw1_b_ref[...], 0.0)                      # (64, m1)
    m4_t = y_t
    for d in (1, 8, 9):                                               # 2x2 window members
        m4_t = jnp.maximum(m4_t, pltpu.roll(y_t, shift=(-d) % m1, axis=1))
    # Select window-origin lanes and swap back to (rows, channels) in one MXU op
    # (contraction over the last dim of both operands, like q @ k^T).
    x = lax.dot_general(sel1_ref[...], m4_t,
                        dimension_numbers=(((1,), (1,)), ((), ())),
                        preferred_element_type=f32)                   # (m2, 64)

    # ---- block 2 ((m, cin) layout) ----
    m2 = x.shape[0]
    acc = jnp.maximum(_dw3x3(x, mw2_ref, w=4, axis=0) + dw2_b_ref[...], 0.0)
    y = jnp.dot(acc.astype(bf16), pw2_w_ref[...], preferred_element_type=f32)
    y = jnp.maximum(y + pw2_b_ref[...], 0.0)                          # (m2, 128)
    m4 = y
    for d in (1, 4, 5):
        m4 = jnp.maximum(m4, pltpu.roll(y, shift=(-d) % m2, axis=0))
    x = jnp.dot(sel2_ref[...], m4, preferred_element_type=f32)        # (m3, 128)

    # ---- block 3 ----
    m3 = x.shape[0]
    acc = jnp.maximum(_dw3x3(x, mw3_ref, w=2, axis=0) + dw3_b_ref[...], 0.0)
    y = jnp.dot(acc.astype(bf16), pw3_w_ref[...], preferred_element_type=f32)
    y = jnp.maximum(y + pw3_b_ref[...], 0.0)                          # (m3, 256)
    m4 = y
    for d in (1, 2, 3):
        m4 = jnp.maximum(m4, pltpu.roll(y, shift=(-d) % m3, axis=0))
    x = jnp.dot(sel3_ref[...], m4, preferred_element_type=f32)        # (n, 256)

    # ---- classifier: Linear -> ReLU -> Dropout(eval: identity) -> Linear ----
    h = jnp.dot(x.astype(bf16), fc1_w_ref[...], preferred_element_type=f32)
    h = jnp.maximum(h + fc1_b_ref[...], 0.0)
    # TODO(synk): Dropout(0.5) has no inference-time effect; identity in eval mode.
    logits = jnp.dot(h.astype(bf16), fc2_w_ref[...], preferred_element_type=f32)
    out_ref[...] = logits + fc2_b_ref[...]                            # (n, 128) lane-dense


# ----------------------------------------------------------------------------
# Parameter init (PyTorch-default-style) and one-time layout preparation
# ----------------------------------------------------------------------------
def init_params(key, num_classes=NUM_CLASSES):
    def u(k, shape, fan_in):
        bound = 1.0 / jnp.sqrt(jnp.float32(fan_in))
        return jax.random.uniform(k, shape, jnp.float32, -bound, bound)

    params = {"blocks": []}
    keys = jax.random.split(key, 4 * len(_BLOCKS) + 4)
    ki = 0
    for cin, cout, _stride in _BLOCKS:
        dw_w = u(keys[ki], (cin, 1, 3, 3), 9); ki += 1
        dw_b = u(keys[ki], (cin,), 9); ki += 1
        pw_w = u(keys[ki], (cout, cin, 1, 1), cin); ki += 1
        pw_b = u(keys[ki], (cout,), cin); ki += 1
        params["blocks"].append((dw_w, dw_b, pw_w, pw_b))
    params["fc1_w"] = u(keys[ki], (512, 256), 256); ki += 1
    params["fc1_b"] = u(keys[ki], (512,), 256); ki += 1
    params["fc2_w"] = u(keys[ki], (num_classes, 512), 512); ki += 1
    params["fc2_b"] = u(keys[ki], (num_classes,), 512); ki += 1
    return params


def prepare_params(tp):
    """Torch-layout params -> kernel layouts (done once). MXU weights -> bf16."""
    bf16 = jnp.bfloat16
    p = {}

    # block 0 (cin = 1), transposed/outer-product form
    dw_w, dw_b, pw_w, pw_b = tp["blocks"][0]
    p["dw0_w"] = dw_w.reshape(9, 1)                   # (1,1,3,3) -> (9,1), k=kh*3+kw
    p["dw0_b"] = dw_b.reshape(1, 1)
    p["pw0_w"] = pw_w.reshape(-1, 1)                  # (32,1,1,1) -> (32,1) column
    p["pw0_b"] = pw_b.reshape(-1, 1)                  # (32,1)

    # block 1 (transposed (cin, m) activations): pw stays (cout, cin)
    dw_w, dw_b, pw_w, pw_b = tp["blocks"][1]
    p["dw1_w9"] = dw_w.reshape(32, 9)                 # (cin, k) f32, masked in forward()
    p["dw1_b"] = dw_b.reshape(32, 1)
    p["pw1_w"] = pw_w.reshape(64, 32).astype(bf16)    # (cout, cin)
    p["pw1_b"] = pw_b.reshape(64, 1)

    # blocks 2, 3 ((m, cin) activations): pw pre-transposed to (cin, cout)
    for i, (cin, cout) in ((2, (64, 128)), (3, (128, 256))):
        dw_w, dw_b, pw_w, pw_b = tp["blocks"][i]
        p[f"dw{i}_w9"] = dw_w.reshape(cin, 9)
        p[f"dw{i}_b"] = dw_b.reshape(1, cin)
        p[f"pw{i}_w"] = pw_w.reshape(cout, cin).T.astype(bf16)
        p[f"pw{i}_b"] = pw_b.reshape(1, cout)

    # classifier (fc2 zero-padded to 128 lanes for an unmasked final store)
    p["fc1_w"] = tp["fc1_w"].T.astype(bf16)           # (256, 512)
    p["fc1_b"] = tp["fc1_b"].reshape(1, -1)
    fc2_w = tp["fc2_w"].T                             # (512, num_classes)
    nc = fc2_w.shape[1]
    p["fc2_w"] = jnp.pad(fc2_w, ((0, 0), (0, _PAD_CLASSES - nc))).astype(bf16)
    p["fc2_b"] = jnp.pad(tp["fc2_b"], (0, _PAD_CLASSES - nc)).reshape(1, _PAD_CLASSES)
    return p


# ----------------------------------------------------------------------------
# Forward pass (mirrors PyTorch Model.forward, eval mode)
# ----------------------------------------------------------------------------
@jax.jit
def forward(params, x_nchw):
    n = x_nchw.shape[0]

    # Block 0's stride-2 3x3 im2col on the tiny (n,1,16,16) input: a few pad /
    # strided-slice ops that fuse into one XLA fusion in front of the kernel.
    # Transposed layout: taps-major, pixels (n, ho, wo) in the lane axis.
    x = x_nchw[:, 0]                                       # (n, 16, 16)
    xp = jnp.pad(x, ((0, 0), (1, 1), (1, 1)))              # (n, 18, 18)
    patches0_t = jnp.stack(
        [xp[:, kh:kh + 16:2, kw:kw + 16:2].reshape(-1)
         for kh in range(3) for kw in range(3)], axis=0)   # (9, n*64)

    # Compile-time constants (note: retraces per new batch size n).
    mask1 = jnp.asarray(_dw_boundary_mask(n, 8, 8))        # (n*64, 9)
    mask2 = jnp.asarray(_dw_boundary_mask(n, 4, 4))        # (n*16, 9)
    mask3 = jnp.asarray(_dw_boundary_mask(n, 2, 2))        # (n*4, 9)
    sel1 = jnp.asarray(_pool_select(n, 8, 8))              # (n*16, n*64)
    sel2 = jnp.asarray(_pool_select(n, 4, 4))              # (n*4, n*16)
    sel3 = jnp.asarray(_pool_select(n, 2, 2))              # (n, n*4)

    # Per-tap masked depthwise weights, precomputed so each in-kernel tap is a
    # single full-width VPU multiply (no broadcasts).
    mw1 = jnp.einsum("ck,mk->kcm", params["dw1_w9"], mask1)  # (9, 32, n*64) transposed
    mw2 = jnp.einsum("mk,ck->kmc", mask2, params["dw2_w9"])  # (9, n*16, 64)
    mw3 = jnp.einsum("mk,ck->kmc", mask3, params["dw3_w9"])  # (9, n*4, 128)

    args = [
        patches0_t, params["dw0_w"], params["dw0_b"], params["pw0_w"], params["pw0_b"],
        mw1, params["dw1_b"], params["pw1_w"], params["pw1_b"], sel1,
        mw2, params["dw2_b"], params["pw2_w"], params["pw2_b"], sel2,
        mw3, params["dw3_b"], params["pw3_w"], params["pw3_b"], sel3,
        params["fc1_w"], params["fc1_b"], params["fc2_w"], params["fc2_b"],
    ]

    # Grid-less single call: everything (~0.8 MB of weights/constants) is VMEM-
    # resident; all activations stay in vregs/VMEM.  For deployment batches >> 2
    # add a leading batch grid axis with dimension_semantics=("parallel",).
    out = pl.pallas_call(
        _mobilenet_fused_kernel,
        out_shape=jax.ShapeDtypeStruct((n, _PAD_CLASSES), jnp.float32),
        in_specs=[pl.BlockSpec(memory_space=pltpu.MemorySpace.VMEM) for _ in args],
        out_specs=pl.BlockSpec(memory_space=pltpu.MemorySpace.VMEM),
    )(*args)
    return out[:, :NUM_CLASSES]


if __name__ == "__main__":
    key = jax.random.PRNGKey(0)
    pkey, xkey = jax.random.split(key)
    torch_layout_params = init_params(pkey, num_classes=NUM_CLASSES)
    params = prepare_params(torch_layout_params)

    # 16x16 single-channel input -> 1x1x256 before the classifier, matching
    # nn.Linear(256 * 1 * 1, 512) in the PyTorch module.
    x = jax.random.normal(xkey, (2, 1, 16, 16), dtype=jnp.float32)  # NCHW
    out = forward(params, x)
    out = jax.block_until_ready(out)

    assert out.shape == (2, NUM_CLASSES) and out.dtype == jnp.float32
    assert bool(jnp.all(jnp.isfinite(out)))
    print("KERNEL_OK")
</pallas_src>

<mosaic_0001>
module attributes {stable_mosaic.version = 11 : i64} {
  func.func @_mobilenet_fused_kernel(%arg0: memref<9x128xf32, #tpu.memory_space<vmem>>, %arg1: memref<9x1xf32, #tpu.memory_space<vmem>>, %arg2: memref<1x1xf32, #tpu.memory_space<vmem>>, %arg3: memref<32x1xf32, #tpu.memory_space<vmem>>, %arg4: memref<32x1xf32, #tpu.memory_space<vmem>>, %arg5: memref<9x32x128xf32, #tpu.memory_space<vmem>>, %arg6: memref<32x1xf32, #tpu.memory_space<vmem>>, %arg7: memref<64x32xbf16, #tpu.memory_space<vmem>>, %arg8: memref<64x1xf32, #tpu.memory_space<vmem>>, %arg9: memref<32x128xf32, #tpu.memory_space<vmem>>, %arg10: memref<9x32x64xf32, #tpu.memory_space<vmem>>, %arg11: memref<1x64xf32, #tpu.memory_space<vmem>>, %arg12: memref<64x128xbf16, #tpu.memory_space<vmem>>, %arg13: memref<1x128xf32, #tpu.memory_space<vmem>>, %arg14: memref<8x32xf32, #tpu.memory_space<vmem>>, %arg15: memref<9x8x128xf32, #tpu.memory_space<vmem>>, %arg16: memref<1x128xf32, #tpu.memory_space<vmem>>, %arg17: memref<128x256xbf16, #tpu.memory_space<vmem>>, %arg18: memref<1x256xf32, #tpu.memory_space<vmem>>, %arg19: memref<2x8xf32, #tpu.memory_space<vmem>>, %arg20: memref<256x512xbf16, #tpu.memory_space<vmem>>, %arg21: memref<1x512xf32, #tpu.memory_space<vmem>>, %arg22: memref<512x128xbf16, #tpu.memory_space<vmem>>, %arg23: memref<1x128xf32, #tpu.memory_space<vmem>>, %arg24: memref<2x128xf32, #tpu.memory_space<vmem>>) attributes {dimension_semantics = [], scalar_prefetch = 0 : i64, scratch_operands = 0 : i64, tpu.core_type = #tpu.core_type<tc>} {
    %c0 = arith.constant 0 : index
    %c0_0 = arith.constant 0 : index
    %0 = vector.load %arg0[%c0, %c0_0] : memref<9x128xf32, #tpu.memory_space<vmem>>, vector<9x128xf32>
    %c0_1 = arith.constant 0 : index
    %c0_2 = arith.constant 0 : index
    %1 = vector.load %arg1[%c0_1, %c0_2] : memref<9x1xf32, #tpu.memory_space<vmem>>, vector<9x1xf32>
    %2 = vector.broadcast %1 : vector<9x1xf32> to vector<9x128xf32>
    %3 = arith.mulf %0, %2 : vector<9x128xf32>
    %cst = arith.constant dense<0.000000e+00> : vector<128xf32>
    %4 = vector.multi_reduction <add>, %3, %cst [0] : vector<9x128xf32> to vector<128xf32>
    %5 = vector.shape_cast %4 : vector<128xf32> to vector<1x128xf32>
    %c0_3 = arith.constant 0 : index
    %c0_4 = arith.constant 0 : index
    %6 = vector.load %arg2[%c0_3, %c0_4] : memref<1x1xf32, #tpu.memory_space<vmem>>, vector<1x1xf32>
    %7 = vector.broadcast %6 : vector<1x1xf32> to vector<1x128xf32>
    %8 = arith.addf %5, %7 : vector<1x128xf32>
    %cst_5 = arith.constant 0.000000e+00 : f32
    %9 = vector.broadcast %cst_5 : f32 to vector<1x128xf32>
    %10 = arith.maximumf %8, %9 : vector<1x128xf32>
    %c0_6 = arith.constant 0 : index
    %c0_7 = arith.constant 0 : index
    %11 = vector.load %arg3[%c0_6, %c0_7] : memref<32x1xf32, #tpu.memory_space<vmem>>, vector<32x1xf32>
    %12 = vector.broadcast %11 : vector<32x1xf32> to vector<32x128xf32>
    %13 = vector.broadcast %10 : vector<1x128xf32> to vector<32x128xf32>
    %14 = arith.mulf %12, %13 : vector<32x128xf32>
    %c0_8 = arith.constant 0 : index
    %c0_9 = arith.constant 0 : index
    %15 = vector.load %arg4[%c0_8, %c0_9] : memref<32x1xf32, #tpu.memory_space<vmem>>, vector<32x1xf32>
    %16 = vector.broadcast %15 : vector<32x1xf32> to vector<32x128xf32>
    %17 = arith.addf %14, %16 : vector<32x128xf32>
    %cst_10 = arith.constant 0.000000e+00 : f32
    %18 = vector.broadcast %cst_10 : f32 to vector<32x128xf32>
    %19 = arith.maximumf %17, %18 : vector<32x128xf32>
    %c9_i32 = arith.constant 9 : i32
    %20 = tpu.dynamic_rotate %19 by %c9_i32 dim 1 : vector<32x128xf32>, i32 -> vector<32x128xf32>
    %c0_11 = arith.constant 0 : index
    %c0_12 = arith.constant 0 : index
    %c0_13 = arith.constant 0 : index
    %21 = vector.load %arg5[%c0_11, %c0_12, %c0_13] : memref<9x32x128xf32, #tpu.memory_space<vmem>>, vector<1x32x128xf32>
    %22 = vector.shape_cast %21 : vector<1x32x128xf32> to vector<32x128xf32>
    %23 = arith.mulf %20, %22 : vector<32x128xf32>
    %c8_i32 = arith.constant 8 : i32
    %24 = tpu.dynamic_rotate %19 by %c8_i32 dim 1 : vector<32x128xf32>, i32 -> vector<32x128xf32>
    %c1 = arith.constant 1 : index
    %c0_14 = arith.constant 0 : index
    %c0_15 = arith.constant 0 : index
    %25 = vector.load %arg5[%c1, %c0_14, %c0_15] : memref<9x32x128xf32, #tpu.memory_space<vmem>>, vector<1x32x128xf32>
    %26 = vector.shape_cast %25 : vector<1x32x128xf32> to vector<32x128xf32>
    %27 = arith.mulf %24, %26 : vector<32x128xf32>
    %28 = arith.addf %23, %27 : vector<32x128xf32>
    %c7_i32 = arith.constant 7 : i32
    %29 = tpu.dynamic_rotate %19 by %c7_i32 dim 1 : vector<32x128xf32>, i32 -> vector<32x128xf32>
    %c2 = arith.constant 2 : index
    %c0_16 = arith.constant 0 : index
    %c0_17 = arith.constant 0 : index
    %30 = vector.load %arg5[%c2, %c0_16, %c0_17] : memref<9x32x128xf32, #tpu.memory_space<vmem>>, vector<1x32x128xf32>
    %31 = vector.shape_cast %30 : vector<1x32x128xf32> to vector<32x128xf32>
    %32 = arith.mulf %29, %31 : vector<32x128xf32>
    %33 = arith.addf %28, %32 : vector<32x128xf32>
    %c1_i32 = arith.constant 1 : i32
    %34 = tpu.dynamic_rotate %19 by %c1_i32 dim 1 : vector<32x128xf32>, i32 -> vector<32x128xf32>
    %c3 = arith.constant 3 : index
    %c0_18 = arith.constant 0 : index
    %c0_19 = arith.constant 0 : index
    %35 = vector.load %arg5[%c3, %c0_18, %c0_19] : memref<9x32x128xf32, #tpu.memory_space<vmem>>, vector<1x32x128xf32>
    %36 = vector.shape_cast %35 : vector<1x32x128xf32> to vector<32x128xf32>
    %37 = arith.mulf %34, %36 : vector<32x128xf32>
    %c4 = arith.constant 4 : index
    %c0_20 = arith.constant 0 : index
    %c0_21 = arith.constant 0 : index
    %38 = vector.load %arg5[%c4, %c0_20, %c0_21] : memref<9x32x128xf32, #tpu.memory_space<vmem>>, vector<1x32x128xf32>
    %39 = vector.shape_cast %38 : vector<1x32x128xf32> to vector<32x128xf32>
    %40 = arith.mulf %19, %39 : vector<32x128xf32>
    %41 = arith.addf %37, %40 : vector<32x128xf32>
    %c127_i32 = arith.constant 127 : i32
    %42 = tpu.dynamic_rotate %19 by %c127_i32 dim 1 : vector<32x128xf32>, i32 -> vector<32x128xf32>
    %c5 = arith.constant 5 : index
    %c0_22 = arith.constant 0 : index
    %c0_23 = arith.constant 0 : index
    %43 = vector.load %arg5[%c5, %c0_22, %c0_23] : memref<9x32x128xf32, #tpu.memory_space<vmem>>, vector<1x32x128xf32>
    %44 = vector.shape_cast %43 : vector<1x32x128xf32> to vector<32x128xf32>
    %45 = arith.mulf %42, %44 : vector<32x128xf32>
    %46 = arith.addf %41, %45 : vector<32x128xf32>
    %c121_i32 = arith.constant 121 : i32
    %47 = tpu.dynamic_rotate %19 by %c121_i32 dim 1 : vector<32x128xf32>, i32 -> vector<32x128xf32>
    %c6 = arith.constant 6 : index
    %c0_24 = arith.constant 0 : index
    %c0_25 = arith.constant 0 : index
    %48 = vector.load %arg5[%c6, %c0_24, %c0_25] : memref<9x32x128xf32, #tpu.memory_space<vmem>>, vector<1x32x128xf32>
    %49 = vector.shape_cast %48 : vector<1x32x128xf32> to vector<32x128xf32>
    %50 = arith.mulf %47, %49 : vector<32x128xf32>
    %c120_i32 = arith.constant 120 : i32
    %51 = tpu.dynamic_rotate %19 by %c120_i32 dim 1 : vector<32x128xf32>, i32 -> vector<32x128xf32>
    %c7 = arith.constant 7 : index
    %c0_26 = arith.constant 0 : index
    %c0_27 = arith.constant 0 : index
    %52 = vector.load %arg5[%c7, %c0_26, %c0_27] : memref<9x32x128xf32, #tpu.memory_space<vmem>>, vector<1x32x128xf32>
    %53 = vector.shape_cast %52 : vector<1x32x128xf32> to vector<32x128xf32>
    %54 = arith.mulf %51, %53 : vector<32x128xf32>
    %55 = arith.addf %50, %54 : vector<32x128xf32>
    %c119_i32 = arith.constant 119 : i32
    %56 = tpu.dynamic_rotate %19 by %c119_i32 dim 1 : vector<32x128xf32>, i32 -> vector<32x128xf32>
    %c8 = arith.constant 8 : index
    %c0_28 = arith.constant 0 : index
    %c0_29 = arith.constant 0 : index
    %57 = vector.load %arg5[%c8, %c0_28, %c0_29] : memref<9x32x128xf32, #tpu.memory_space<vmem>>, vector<1x32x128xf32>
    %58 = vector.shape_cast %57 : vector<1x32x128xf32> to vector<32x128xf32>
    %59 = arith.mulf %56, %58 : vector<32x128xf32>
    %60 = arith.addf %55, %59 : vector<32x128xf32>
    %61 = arith.addf %33, %46 : vector<32x128xf32>
    %62 = arith.addf %61, %60 : vector<32x128xf32>
    %c0_30 = arith.constant 0 : index
    %c0_31 = arith.constant 0 : index
    %63 = vector.load %arg6[%c0_30, %c0_31] : memref<32x1xf32, #tpu.memory_space<vmem>>, vector<32x1xf32>
    %64 = vector.broadcast %63 : vector<32x1xf32> to vector<32x128xf32>
    %65 = arith.addf %62, %64 : vector<32x128xf32>
    %cst_32 = arith.constant 0.000000e+00 : f32
    %66 = vector.broadcast %cst_32 : f32 to vector<32x128xf32>
    %67 = arith.maximumf %65, %66 : vector<32x128xf32>
    %c0_33 = arith.constant 0 : index
    %c0_34 = arith.constant 0 : index
    %68 = vector.load %arg7[%c0_33, %c0_34] : memref<64x32xbf16, #tpu.memory_space<vmem>>, vector<64x32xbf16>
    %69 = arith.truncf %67 : vector<32x128xf32> to vector<32x128xbf16>
    %cst_35 = arith.constant dense<0.000000e+00> : vector<64x128xf32>
    %70 = tpu.matmul %68, %69, %cst_35 {dimension_numbers = #tpu.dot_dimension_numbers<[1], [0], [0], [1], [0, 0, 1, 1], [], []>} : vector<64x32xbf16>, vector<32x128xbf16>, vector<64x128xf32> -> vector<64x128xf32>
    %c0_36 = arith.constant 0 : index
    %c0_37 = arith.constant 0 : index
    %71 = vector.load %arg8[%c0_36, %c0_37] : memref<64x1xf32, #tpu.memory_space<vmem>>, vector<64x1xf32>
    %72 = vector.broadcast %71 : vector<64x1xf32> to vector<64x128xf32>
    %73 = arith.addf %70, %72 : vector<64x128xf32>
    %cst_38 = arith.constant 0.000000e+00 : f32
    %74 = vector.broadcast %cst_38 : f32 to vector<64x128xf32>
    %75 = arith.maximumf %73, %74 : vector<64x128xf32>
    %c127_i32_39 = arith.constant 127 : i32
    %76 = tpu.dynamic_rotate %75 by %c127_i32_39 dim 1 : vector<64x128xf32>, i32 -> vector<64x128xf32>
    %77 = arith.maximumf %75, %76 : vector<64x128xf32>
    %c120_i32_40 = arith.constant 120 : i32
    %78 = tpu.dynamic_rotate %75 by %c120_i32_40 dim 1 : vector<64x128xf32>, i32 -> vector<64x128xf32>
    %79 = arith.maximumf %77, %78 : vector<64x128xf32>
    %c119_i32_41 = arith.constant 119 : i32
    %80 = tpu.dynamic_rotate %75 by %c119_i32_41 dim 1 : vector<64x128xf32>, i32 -> vector<64x128xf32>
    %81 = arith.maximumf %79, %80 : vector<64x128xf32>
    %c0_42 = arith.constant 0 : index
    %c0_43 = arith.constant 0 : index
    %82 = vector.load %arg9[%c0_42, %c0_43] : memref<32x128xf32, #tpu.memory_space<vmem>>, vector<32x128xf32>
    %cst_44 = arith.constant dense<0.000000e+00> : vector<32x64xf32>
    %83 = tpu.matmul %82, %81, %cst_44 {dimension_numbers = #tpu.dot_dimension_numbers<[1], [1], [0], [0], [0, 0, 1, 0], [], []>} : vector<32x128xf32>, vector<64x128xf32>, vector<32x64xf32> -> vector<32x64xf32>
    %c5_i32 = arith.constant 5 : i32
    %84 = tpu.dynamic_rotate %83 by %c5_i32 dim 0 : vector<32x64xf32>, i32 -> vector<32x64xf32>
    %c0_45 = arith.constant 0 : index
    %c0_46 = arith.constant 0 : index
    %c0_47 = arith.constant 0 : index
    %85 = vector.load %arg10[%c0_45, %c0_46, %c0_47] : memref<9x32x64xf32, #tpu.memory_space<vmem>>, vector<1x32x64xf32>
    %86 = vector.shape_cast %85 : vector<1x32x64xf32> to vector<32x64xf32>
    %87 = arith.mulf %84, %86 : vector<32x64xf32>
    %c4_i32 = arith.constant 4 : i32
    %88 = tpu.dynamic_rotate %83 by %c4_i32 dim 0 : vector<32x64xf32>, i32 -> vector<32x64xf32>
    %c1_48 = arith.constant 1 : index
    %c0_49 = arith.constant 0 : index
    %c0_50 = arith.constant 0 : index
    %89 = vector.load %arg10[%c1_48, %c0_49, %c0_50] : memref<9x32x64xf32, #tpu.memory_space<vmem>>, vector<1x32x64xf32>
    %90 = vector.shape_cast %89 : vector<1x32x64xf32> to vector<32x64xf32>
    %91 = arith.mulf %88, %90 : vector<32x64xf32>
    %92 = arith.addf %87, %91 : vector<32x64xf32>
    %c3_i32 = arith.constant 3 : i32
    %93 = tpu.dynamic_rotate %83 by %c3_i32 dim 0 : vector<32x64xf32>, i32 -> vector<32x64xf32>
    %c2_51 = arith.constant 2 : index
    %c0_52 = arith.constant 0 : index
    %c0_53 = arith.constant 0 : index
    %94 = vector.load %arg10[%c2_51, %c0_52, %c0_53] : memref<9x32x64xf32, #tpu.memory_space<vmem>>, vector<1x32x64xf32>
    %95 = vector.shape_cast %94 : vector<1x32x64xf32> to vector<32x64xf32>
    %96 = arith.mulf %93, %95 : vector<32x64xf32>
    %97 = arith.addf %92, %96 : vector<32x64xf32>
    %c1_i32_54 = arith.constant 1 : i32
    %98 = tpu.dynamic_rotate %83 by %c1_i32_54 dim 0 : vector<32x64xf32>, i32 -> vector<32x64xf32>
    %c3_55 = arith.constant 3 : index
    %c0_56 = arith.constant 0 : index
    %c0_57 = arith.constant 0 : index
    %99 = vector.load %arg10[%c3_55, %c0_56, %c0_57] : memref<9x32x64xf32, #tpu.memory_space<vmem>>, vector<1x32x64xf32>
    %100 = vector.shape_cast %99 : vector<1x32x64xf32> to vector<32x64xf32>
    %101 = arith.mulf %98, %100 : vector<32x64xf32>
    %c4_58 = arith.constant 4 : index
    %c0_59 = arith.constant 0 : index
    %c0_60 = arith.constant 0 : index
    %102 = vector.load %arg10[%c4_58, %c0_59, %c0_60] : memref<9x32x64xf32, #tpu.memory_space<vmem>>, vector<1x32x64xf32>
    %103 = vector.shape_cast %102 : vector<1x32x64xf32> to vector<32x64xf32>
    %104 = arith.mulf %83, %103 : vector<32x64xf32>
    %105 = arith.addf %101, %104 : vector<32x64xf32>
    %c31_i32 = arith.constant 31 : i32
    %106 = tpu.dynamic_rotate %83 by %c31_i32 dim 0 : vector<32x64xf32>, i32 -> vector<32x64xf32>
    %c5_61 = arith.constant 5 : index
    %c0_62 = arith.constant 0 : index
    %c0_63 = arith.constant 0 : index
    %107 = vector.load %arg10[%c5_61, %c0_62, %c0_63] : memref<9x32x64xf32, #tpu.memory_space<vmem>>, vector<1x32x64xf32>
    %108 = vector.shape_cast %107 : vector<1x32x64xf32> to vector<32x64xf32>
    %109 = arith.mulf %106, %108 : vector<32x64xf32>
    %110 = arith.addf %105, %109 : vector<32x64xf32>
    %c29_i32 = arith.constant 29 : i32
    %111 = tpu.dynamic_rotate %83 by %c29_i32 dim 0 : vector<32x64xf32>, i32 -> vector<32x64xf32>
    %c6_64 = arith.constant 6 : index
    %c0_65 = arith.constant 0 : index
    %c0_66 = arith.constant 0 : index
    %112 = vector.load %arg10[%c6_64, %c0_65, %c0_66] : memref<9x32x64xf32, #tpu.memory_space<vmem>>, vector<1x32x64xf32>
    %113 = vector.shape_cast %112 : vector<1x32x64xf32> to vector<32x64xf32>
    %114 = arith.mulf %111, %113 : vector<32x64xf32>
    %c28_i32 = arith.constant 28 : i32
    %115 = tpu.dynamic_rotate %83 by %c28_i32 dim 0 : vector<32x64xf32>, i32 -> vector<32x64xf32>
    %c7_67 = arith.constant 7 : index
    %c0_68 = arith.constant 0 : index
    %c0_69 = arith.constant 0 : index
    %116 = vector.load %arg10[%c7_67, %c0_68, %c0_69] : memref<9x32x64xf32, #tpu.memory_space<vmem>>, vector<1x32x64xf32>
    %117 = vector.shape_cast %116 : vector<1x32x64xf32> to vector<32x64xf32>
    %118 = arith.mulf %115, %117 : vector<32x64xf32>
    %119 = arith.addf %114, %118 : vector<32x64xf32>
    %c27_i32 = arith.constant 27 : i32
    %120 = tpu.dynamic_rotate %83 by %c27_i32 dim 0 : vector<32x64xf32>, i32 -> vector<32x64xf32>
    %c8_70 = arith.constant 8 : index
    %c0_71 = arith.constant 0 : index
    %c0_72 = arith.constant 0 : index
    %121 = vector.load %arg10[%c8_70, %c0_71, %c0_72] : memref<9x32x64xf32, #tpu.memory_space<vmem>>, vector<1x32x64xf32>
    %122 = vector.shape_cast %121 : vector<1x32x64xf32> to vector<32x64xf32>
    %123 = arith.mulf %120, %122 : vector<32x64xf32>
    %124 = arith.addf %119, %123 : vector<32x64xf32>
    %125 = arith.addf %97, %110 : vector<32x64xf32>
    %126 = arith.addf %125, %124 : vector<32x64xf32>
    %c0_73 = arith.constant 0 : index
    %c0_74 = arith.constant 0 : index
    %127 = vector.load %arg11[%c0_73, %c0_74] : memref<1x64xf32, #tpu.memory_space<vmem>>, vector<1x64xf32>
    %128 = vector.broadcast %127 : vector<1x64xf32> to vector<32x64xf32>
    %129 = arith.addf %126, %128 : vector<32x64xf32>
    %cst_75 = arith.constant 0.000000e+00 : f32
    %130 = vector.broadcast %cst_75 : f32 to vector<32x64xf32>
    %131 = arith.maximumf %129, %130 : vector<32x64xf32>
    %132 = arith.truncf %131 : vector<32x64xf32> to vector<32x64xbf16>
    %c0_76 = arith.constant 0 : index
    %c0_77 = arith.constant 0 : index
    %133 = vector.load %arg12[%c0_76, %c0_77] : memref<64x128xbf16, #tpu.memory_space<vmem>>, vector<64x128xbf16>
    %cst_78 = arith.constant dense<0.000000e+00> : vector<32x128xf32>
    %134 = tpu.matmul %132, %133, %cst_78 {dimension_numbers = #tpu.dot_dimension_numbers<[1], [0], [0], [1], [0, 0, 1, 1], [], []>} : vector<32x64xbf16>, vector<64x128xbf16>, vector<32x128xf32> -> vector<32x128xf32>
    %c0_79 = arith.constant 0 : index
    %c0_80 = arith.constant 0 : index
    %135 = vector.load %arg13[%c0_79, %c0_80] : memref<1x128xf32, #tpu.memory_space<vmem>>, vector<1x128xf32>
    %136 = vector.broadcast %135 : vector<1x128xf32> to vector<32x128xf32>
    %137 = arith.addf %134, %136 : vector<32x128xf32>
    %cst_81 = arith.constant 0.000000e+00 : f32
    %138 = vector.broadcast %cst_81 : f32 to vector<32x128xf32>
    %139 = arith.maximumf %137, %138 : vector<32x128xf32>
    %c31_i32_82 = arith.constant 31 : i32
    %140 = tpu.dynamic_rotate %139 by %c31_i32_82 dim 0 : vector<32x128xf32>, i32 -> vector<32x128xf32>
    %141 = arith.maximumf %139, %140 : vector<32x128xf32>
    %c28_i32_83 = arith.constant 28 : i32
    %142 = tpu.dynamic_rotate %139 by %c28_i32_83 dim 0 : vector<32x128xf32>, i32 -> vector<32x128xf32>
    %143 = arith.maximumf %141, %142 : vector<32x128xf32>
    %c27_i32_84 = arith.constant 27 : i32
    %144 = tpu.dynamic_rotate %139 by %c27_i32_84 dim 0 : vector<32x128xf32>, i32 -> vector<32x128xf32>
    %145 = arith.maximumf %143, %144 : vector<32x128xf32>
    %c0_85 = arith.constant 0 : index
    %c0_86 = arith.constant 0 : index
    %146 = vector.load %arg14[%c0_85, %c0_86] : memref<8x32xf32, #tpu.memory_space<vmem>>, vector<8x32xf32>
    %cst_87 = arith.constant dense<0.000000e+00> : vector<8x128xf32>
    %147 = tpu.matmul %146, %145, %cst_87 {dimension_numbers = #tpu.dot_dimension_numbers<[1], [0], [0], [1], [0, 0, 1, 1], [], []>} : vector<8x32xf32>, vector<32x128xf32>, vector<8x128xf32> -> vector<8x128xf32>
    %c3_i32_88 = arith.constant 3 : i32
    %148 = tpu.dynamic_rotate %147 by %c3_i32_88 dim 0 : vector<8x128xf32>, i32 -> vector<8x128xf32>
    %c0_89 = arith.constant 0 : index
    %c0_90 = arith.constant 0 : index
    %c0_91 = arith.constant 0 : index
    %149 = vector.load %arg15[%c0_89, %c0_90, %c0_91] : memref<9x8x128xf32, #tpu.memory_space<vmem>>, vector<1x8x128xf32>
    %150 = vector.shape_cast %149 : vector<1x8x128xf32> to vector<8x128xf32>
    %151 = arith.mulf %148, %150 : vector<8x128xf32>
    %c2_i32 = arith.constant 2 : i32
    %152 = tpu.dynamic_rotate %147 by %c2_i32 dim 0 : vector<8x128xf32>, i32 -> vector<8x128xf32>
    %c1_92 = arith.constant 1 : index
    %c0_93 = arith.constant 0 : index
    %c0_94 = arith.constant 0 : index
    %153 = vector.load %arg15[%c1_92, %c0_93, %c0_94] : memref<9x8x128xf32, #tpu.memory_space<vmem>>, vector<1x8x128xf32>
    %154 = vector.shape_cast %153 : vector<1x8x128xf32> to vector<8x128xf32>
    %155 = arith.mulf %152, %154 : vector<8x128xf32>
    %156 = arith.addf %151, %155 : vector<8x128xf32>
    %c1_i32_95 = arith.constant 1 : i32
    %157 = tpu.dynamic_rotate %147 by %c1_i32_95 dim 0 : vector<8x128xf32>, i32 -> vector<8x128xf32>
    %c2_96 = arith.constant 2 : index
    %c0_97 = arith.constant 0 : index
    %c0_98 = arith.constant 0 : index
    %158 = vector.load %arg15[%c2_96, %c0_97, %c0_98] : memref<9x8x128xf32, #tpu.memory_space<vmem>>, vector<1x8x128xf32>
    %159 = vector.shape_cast %158 : vector<1x8x128xf32> to vector<8x128xf32>
    %160 = arith.mulf %157, %159 : vector<8x128xf32>
    %161 = arith.addf %156, %160 : vector<8x128xf32>
    %c1_i32_99 = arith.constant 1 : i32
    %162 = tpu.dynamic_rotate %147 by %c1_i32_99 dim 0 : vector<8x128xf32>, i32 -> vector<8x128xf32>
    %c3_100 = arith.constant 3 : index
    %c0_101 = arith.constant 0 : index
    %c0_102 = arith.constant 0 : index
    %163 = vector.load %arg15[%c3_100, %c0_101, %c0_102] : memref<9x8x128xf32, #tpu.memory_space<vmem>>, vector<1x8x128xf32>
    %164 = vector.shape_cast %163 : vector<1x8x128xf32> to vector<8x128xf32>
    %165 = arith.mulf %162, %164 : vector<8x128xf32>
    %c4_103 = arith.constant 4 : index
    %c0_104 = arith.constant 0 : index
    %c0_105 = arith.constant 0 : index
    %166 = vector.load %arg15[%c4_103, %c0_104, %c0_105] : memref<9x8x128xf32, #tpu.memory_space<vmem>>, vector<1x8x128xf32>
    %167 = vector.shape_cast %166 : vector<1x8x128xf32> to vector<8x128xf32>
    %168 = arith.mulf %147, %167 : vector<8x128xf32>
    %169 = arith.addf %165, %168 : vector<8x128xf32>
    %c7_i32_106 = arith.constant 7 : i32
    %170 = tpu.dynamic_rotate %147 by %c7_i32_106 dim 0 : vector<8x128xf32>, i32 -> vector<8x128xf32>
    %c5_107 = arith.constant 5 : index
    %c0_108 = arith.constant 0 : index
    %c0_109 = arith.constant 0 : index
    %171 = vector.load %arg15[%c5_107, %c0_108, %c0_109] : memref<9x8x128xf32, #tpu.memory_space<vmem>>, vector<1x8x128xf32>
    %172 = vector.shape_cast %171 : vector<1x8x128xf32> to vector<8x128xf32>
    %173 = arith.mulf %170, %172 : vector<8x128xf32>
    %174 = arith.addf %169, %173 : vector<8x128xf32>
    %c7_i32_110 = arith.constant 7 : i32
    %175 = tpu.dynamic_rotate %147 by %c7_i32_110 dim 0 : vector<8x128xf32>, i32 -> vector<8x128xf32>
    %c6_111 = arith.constant 6 : index
    %c0_112 = arith.constant 0 : index
    %c0_113 = arith.constant 0 : index
    %176 = vector.load %arg15[%c6_111, %c0_112, %c0_113] : memref<9x8x128xf32, #tpu.memory_space<vmem>>, vector<1x8x128xf32>
    %177 = vector.shape_cast %176 : vector<1x8x128xf32> to vector<8x128xf32>
    %178 = arith.mulf %175, %177 : vector<8x128xf32>
    %c6_i32 = arith.constant 6 : i32
    %179 = tpu.dynamic_rotate %147 by %c6_i32 dim 0 : vector<8x128xf32>, i32 -> vector<8x128xf32>
    %c7_114 = arith.constant 7 : index
    %c0_115 = arith.constant 0 : index
    %c0_116 = arith.constant 0 : index
    %180 = vector.load %arg15[%c7_114, %c0_115, %c0_116] : memref<9x8x128xf32, #tpu.memory_space<vmem>>, vector<1x8x128xf32>
    %181 = vector.shape_cast %180 : vector<1x8x128xf32> to vector<8x128xf32>
    %182 = arith.mulf %179, %181 : vector<8x128xf32>
    %183 = arith.addf %178, %182 : vector<8x128xf32>
    %c5_i32_117 = arith.constant 5 : i32
    %184 = tpu.dynamic_rotate %147 by %c5_i32_117 dim 0 : vector<8x128xf32>, i32 -> vector<8x128xf32>
    %c8_118 = arith.constant 8 : index
    %c0_119 = arith.constant 0 : index
    %c0_120 = arith.constant 0 : index
    %185 = vector.load %arg15[%c8_118, %c0_119, %c0_120] : memref<9x8x128xf32, #tpu.memory_space<vmem>>, vector<1x8x128xf32>
    %186 = vector.shape_cast %185 : vector<1x8x128xf32> to vector<8x128xf32>
    %187 = arith.mulf %184, %186 : vector<8x128xf32>
    %188 = arith.addf %183, %187 : vector<8x128xf32>
    %189 = arith.addf %161, %174 : vector<8x128xf32>
    %190 = arith.addf %189, %188 : vector<8x128xf32>
    %c0_121 = arith.constant 0 : index
    %c0_122 = arith.constant 0 : index
    %191 = vector.load %arg16[%c0_121, %c0_122] : memref<1x128xf32, #tpu.memory_space<vmem>>, vector<1x128xf32>
    %192 = vector.broadcast %191 : vector<1x128xf32> to vector<8x128xf32>
    %193 = arith.addf %190, %192 : vector<8x128xf32>
    %cst_123 = arith.constant 0.000000e+00 : f32
    %194 = vector.broadcast %cst_123 : f32 to vector<8x128xf32>
    %195 = arith.maximumf %193, %194 : vector<8x128xf32>
    %196 = arith.truncf %195 : vector<8x128xf32> to vector<8x128xbf16>
    %c0_124 = arith.constant 0 : index
    %c0_125 = arith.constant 0 : index
    %197 = vector.load %arg17[%c0_124, %c0_125] : memref<128x256xbf16, #tpu.memory_space<vmem>>, vector<128x256xbf16>
    %cst_126 = arith.constant dense<0.000000e+00> : vector<8x256xf32>
    %198 = tpu.matmul %196, %197, %cst_126 {dimension_numbers = #tpu.dot_dimension_numbers<[1], [0], [0], [1], [0, 0, 1, 1], [], []>} : vector<8x128xbf16>, vector<128x256xbf16>, vector<8x256xf32> -> vector<8x256xf32>
    %c0_127 = arith.constant 0 : index
    %c0_128 = arith.constant 0 : index
    %199 = vector.load %arg18[%c0_127, %c0_128] : memref<1x256xf32, #tpu.memory_space<vmem>>, vector<1x256xf32>
    %200 = vector.broadcast %199 : vector<1x256xf32> to vector<8x256xf32>
    %201 = arith.addf %198, %200 : vector<8x256xf32>
    %cst_129 = arith.constant 0.000000e+00 : f32
    %202 = vector.broadcast %cst_129 : f32 to vector<8x256xf32>
    %203 = arith.maximumf %201, %202 : vector<8x256xf32>
    %c7_i32_130 = arith.constant 7 : i32
    %204 = tpu.dynamic_rotate %203 by %c7_i32_130 dim 0 : vector<8x256xf32>, i32 -> vector<8x256xf32>
    %205 = arith.maximumf %203, %204 : vector<8x256xf32>
    %c6_i32_131 = arith.constant 6 : i32
    %206 = tpu.dynamic_rotate %203 by %c6_i32_131 dim 0 : vector<8x256xf32>, i32 -> vector<8x256xf32>
    %207 = arith.maximumf %205, %206 : vector<8x256xf32>
    %c5_i32_132 = arith.constant 5 : i32
    %208 = tpu.dynamic_rotate %203 by %c5_i32_132 dim 0 : vector<8x256xf32>, i32 -> vector<8x256xf32>
    %209 = arith.maximumf %207, %208 : vector<8x256xf32>
    %c0_133 = arith.constant 0 : index
    %c0_134 = arith.constant 0 : index
    %210 = vector.load %arg19[%c0_133, %c0_134] : memref<2x8xf32, #tpu.memory_space<vmem>>, vector<2x8xf32>
    %cst_135 = arith.constant dense<0.000000e+00> : vector<2x256xf32>
    %211 = tpu.matmul %210, %209, %cst_135 {dimension_numbers = #tpu.dot_dimension_numbers<[1], [0], [0], [1], [0, 0, 1, 1], [], []>} : vector<2x8xf32>, vector<8x256xf32>, vector<2x256xf32> -> vector<2x256xf32>
    %212 = arith.truncf %211 : vector<2x256xf32> to vector<2x256xbf16>
    %c0_136 = arith.constant 0 : index
    %c0_137 = arith.constant 0 : index
    %213 = vector.load %arg20[%c0_136, %c0_137] : memref<256x512xbf16, #tpu.memory_space<vmem>>, vector<256x512xbf16>
    %cst_138 = arith.constant dense<0.000000e+00> : vector<2x512xf32>
    %214 = tpu.matmul %212, %213, %cst_138 {dimension_numbers = #tpu.dot_dimension_numbers<[1], [0], [0], [1], [0, 0, 1, 1], [], []>} : vector<2x256xbf16>, vector<256x512xbf16>, vector<2x512xf32> -> vector<2x512xf32>
    %c0_139 = arith.constant 0 : index
    %c0_140 = arith.constant 0 : index
    %215 = vector.load %arg21[%c0_139, %c0_140] : memref<1x512xf32, #tpu.memory_space<vmem>>, vector<1x512xf32>
    %216 = vector.broadcast %215 : vector<1x512xf32> to vector<2x512xf32>
    %217 = arith.addf %214, %216 : vector<2x512xf32>
    %cst_141 = arith.constant 0.000000e+00 : f32
    %218 = vector.broadcast %cst_141 : f32 to vector<2x512xf32>
    %219 = arith.maximumf %217, %218 : vector<2x512xf32>
    %220 = arith.truncf %219 : vector<2x512xf32> to vector<2x512xbf16>
    %c0_142 = arith.constant 0 : index
    %c0_143 = arith.constant 0 : index
    %221 = vector.load %arg22[%c0_142, %c0_143] : memref<512x128xbf16, #tpu.memory_space<vmem>>, vector<512x128xbf16>
    %cst_144 = arith.constant dense<0.000000e+00> : vector<2x128xf32>
    %222 = tpu.matmul %220, %221, %cst_144 {dimension_numbers = #tpu.dot_dimension_numbers<[1], [0], [0], [1], [0, 0, 1, 1], [], []>} : vector<2x512xbf16>, vector<512x128xbf16>, vector<2x128xf32> -> vector<2x128xf32>
    %c0_145 = arith.constant 0 : index
    %c0_146 = arith.constant 0 : index
    %223 = vector.load %arg23[%c0_145, %c0_146] : memref<1x128xf32, #tpu.memory_space<vmem>>, vector<1x128xf32>
    %224 = vector.broadcast %223 : vector<1x128xf32> to vector<2x128xf32>
    %225 = arith.addf %222, %224 : vector<2x128xf32>
    %c0_147 = arith.constant 0 : index
    %c0_148 = arith.constant 0 : index
    %226 = vector.load %arg24[%c0_147, %c0_148] : memref<2x128xf32, #tpu.memory_space<vmem>>, vector<2x128xf32>
    tpu.vector_store %arg24[%c0_147, %c0_148], %225 {strides = array<i32>} : memref<2x128xf32, #tpu.memory_space<vmem>>, vector<2x128xf32>,
    return
  }
}

</mosaic_0001>

<bundles_post_ra>
// kernel: forward.1
= control target key start
LH: loop header
LB: loop body
LE: loop exit
PB: predicated region body
PF: predicated region fallthrough
CT: control target
= control target key end

     0   :  { %s4057_s0 = inlined_call_operand.vmem [shape: f32[9,128], index: 0, kind: input, shape index: {}]   ;;  %s4058_s1 = inlined_call_operand.vmem [shape: f32[9,1], index: 1, kind: input, shape index: {}]   ;;  %s4059_s2 = inlined_call_operand.<no memory space> [shape: f32[1,1], index: 2, kind: input, shape index: {}]   ;;  %s4060_s3 = inlined_call_operand.vmem [shape: f32[32,1], index: 3, kind: input, shape index: {}]   ;;  %s4061_s4 = inlined_call_operand.vmem [shape: f32[32,1], index: 4, kind: input, shape index: {}]   ;;  %s4062_s5 = inlined_call_operand.vmem [shape: f32[9,32,128], index: 5, kind: input, shape index: {}]   ;;  %s4063_s6 = inlined_call_operand.vmem [shape: f32[32,1], index: 6, kind: input, shape index: {}]   ;;  %s4064_s7 = inlined_call_operand.vmem [shape: bf16[64,32], index: 7, kind: input, shape index: {}]   ;;  %s4065_s8 = inlined_call_operand.vmem [shape: f32[64,1], index: 8, kind: input, shape index: {}]   ;;  %s4066_s9 = inlined_call_operand.vmem [shape: f32[32,128], index: 9, kind: input, shape index: {}]   ;;  %s4067_s10 = inlined_call_operand.vmem [shape: f32[9,32,64], index: 10, kind: input, shape index: {}]   ;;  %s4068_s11 = inlined_call_operand.vmem [shape: f32[1,64], index: 11, kind: input, shape index: {}]   ;;  %s4069_s12 = inlined_call_operand.vmem [shape: bf16[64,128], index: 12, kind: input, shape index: {}]   ;;  %s4070_s13 = inlined_call_operand.vmem [shape: f32[1,128], index: 13, kind: input, shape index: {}]   ;;  %s4071_s14 = inlined_call_operand.vmem [shape: f32[8,32], index: 14, kind: input, shape index: {}]   ;;  %s4072_s15 = inlined_call_operand.vmem [shape: f32[9,8,128], index: 15, kind: input, shape index: {}]   ;;  %s4073_s16 = inlined_call_operand.vmem [shape: f32[1,128], index: 16, kind: input, shape index: {}]   ;;  %s4074_s17 = inlined_call_operand.vmem [shape: bf16[128,256], index: 17, kind: input, shape index: {}]   ;;  %s4075_s18 = inlined_call_operand.vmem [shape: f32[1,256], index: 18, kind: input, shape index: {}]   ;;  %s4076_s19 = inlined_call_operand.vmem [shape: f32[2,8], index: 19, kind: input, shape index: {}]   ;;  %s4077_s20 = inlined_call_operand.vmem [shape: bf16[256,512], index: 20, kind: input, shape index: {}]   ;;  %s4078_s21 = inlined_call_operand.vmem [shape: f32[1,512], index: 21, kind: input, shape index: {}]   ;;  %s4079_s22 = inlined_call_operand.vmem [shape: bf16[512,128], index: 22, kind: input, shape index: {}]   ;;  %s4080_s23 = inlined_call_operand.vmem [shape: f32[1,128], index: 23, kind: input, shape index: {}]   ;;  %s4081_s24 = inlined_call_operand.hbm [shape: f32[2,128], index: 24, kind: output, shape index: {}]  }
   0x1   :  { %4094 = sst [smem:[#allocation6_spill]] %s4057_s0 }
   0x2   :  { %4095 = sst [smem:[#allocation7_spill]] %s4058_s1 }
   0x3   :  { %4096 = sst [smem:[#allocation8_spill]] %s4059_s2 }
   0x4   :  { %4097 = sst [smem:[#allocation9_spill]] %s4060_s3  ;;  %s4103_s27 = sld [smem:[#allocation8_spill]] }
   0x5   :  { %4098 = sst [smem:[#allocation10_spill]] %s4061_s4 }
   0x6   :  { %4099 = sst [smem:[#allocation11_spill]] %s4062_s5 }
   0x7   :  { %4100 = sst [smem:[#allocation12_spill]] %s4063_s6 }
   0x8   :  { %4101 = sst [smem:[#allocation13_spill]] %s4064_s7 }
   0x9   :  { %4102 = sst [smem:[#allocation14_spill]] %s4065_s8 }
   0xa   :  { %v29_v0 = vstv %s4103_s27 }
   0xb   :  { %30 = vst [vmem:[#allocation2] sm:$0x1] %v29_v0 }
   0xc   :  { %s4104_s2 = sld [smem:[#allocation7_spill]]  ;;  %v2856_v3 = vmov 0   ;;  %s4105_s7 = sld [smem:[#allocation9_spill]] }
   0xd   :  { %2611 = vset.pattern.permute.xlu1 %v2856_v3  ;;  %2610 = vset.pattern.permute.xlu0 %v2856_v3  ;;  %s4106_s4 = sld [smem:[#allocation10_spill]]  ;;  %s4107_s8 = sld [smem:[#allocation12_spill]] }
  0x12   :  { %v106_v1 = vld [vmem:[#allocation2] sm:$0x1]  ;;  %v84_v2 = vld [vmem:[%s4104_s2 + $0x8] sm:$0x1]  ;;  %v120_v8 = vld [vmem:[%s4105_s7 + $0x10] sm:$0xff] }
  0x13   :  { %109 = vperm.xlu1 %2611, %v106_v1   ;;  %92 = vperm.xlu0 %2610, %v84_v2   ;;  %v118_v4 = vld [vmem:[%s4105_s7] sm:$0xff]  ;;  %v119_v7 = vld [vmem:[%s4105_s7 + $0x8] sm:$0xff]  ;;  %v148_v10 = vld [vmem:[%s4106_s4 + $0x10] sm:$0xff] }
  0x14   :  { %v83_v5 = vld [vmem:[%s4104_s2] sm:$0xff]  ;;  %v147_v9 = vld [vmem:[%s4106_s4 + $0x8] sm:$0xff]  ;;  %v121_v11 = vld [vmem:[%s4105_s7 + $0x18] sm:$0xff] }
  0x15   :  { %v146_v6 = vld [vmem:[%s4106_s4] sm:$0xff]  ;;  %v149_v13 = vld [vmem:[%s4106_s4 + $0x18] sm:$0xff]  ;;  %v356_v14 = vld [vmem:[%s4107_s8 + $0x10] sm:$0xff] }
  0x16   :  { %v354_v12 = vld [vmem:[%s4107_s8] sm:$0xff]  ;;  %v355_v15 = vld [vmem:[%s4107_s8 + $0x8] sm:$0xff]  ;;  %v357_v16 = vld [vmem:[%s4107_s8 + $0x18] sm:$0xff] }
  0x17   :  { %124 = vperm.xlu1 %2611, %v118_v4   ;;  %87 = vperm.xlu0 %2610, %v83_v5  }
  0x1b   :  { %152 = vperm.xlu1 %2611, %v146_v6   ;;  %129 = vperm.xlu0 %2610, %v119_v7  }
  0x1f   :  { %134 = vperm.xlu1 %2611, %v120_v8   ;;  %157 = vperm.xlu0 %2610, %v147_v9  }
  0x23   :  { %162 = vperm.xlu1 %2611, %v148_v10   ;;  %139 = vperm.xlu0 %2610, %v121_v11  }
  0x27   :  { %360 = vperm.xlu1 %2611, %v354_v12   ;;  %167 = vperm.xlu0 %2610, %v149_v13  }
  0x2b   :  { %370 = vperm.xlu1 %2611, %v356_v14   ;;  %365 = vperm.xlu0 %2610, %v355_v15  }
  0x2f   :  { %375 = vperm.xlu0 %2610, %v357_v16  }
  0x30   :  { %31 = vsyncpa [#allocation4], 0  ;;  %s4108_s0 = sld [smem:[#allocation6_spill]]  ;;  %vm97_vm0 = vcmask 1040384   ;;  %v112_v22 = vlaneseq  ;;  %s2857_s25 = smov 9   ;;  %vm464_vm1 = vcmask 261120  }
  0x31   :  { %s2858_s8 = smov 8   ;;  %s2859_s1 = smov 1   ;;  %vm926_vm7 = vcmask 523264   ;;  %vm2866_vm8 = vmmov 0   ;;  %vm1310_vm9 = vcmask 64512  }
  0x32   :  { %v3047_v26 = vshrl.u32 %v112_v22, 7  ;;  %s2860_s5 = smov 7   ;;  %s4092_s26 = smov 127  }
  0x33   :  { %s2862_s27 = smov 121   ;;  %s2863_s28 = smov 120  }
  0x34   :  { %v3050_v29 = vsub.s32 0, %v3047_v26  ;;  %s4090_s6 = smov 119   ;;  %s4109_s4 = sld [smem:[#allocation13_spill]]  ;;  %vm809_vm2 = vcmp.lt.s32.totalorder %v3047_v26, 7  ;;  %vm717_vm3 = vcmp.lt.s32.totalorder %v3047_v26, 5  ;;  %vm734_vm4 = vcmp.lt.s32.totalorder %v3047_v26, 4 }
  0x35   :  { %s4110_s30 = sld [smem:[#allocation14_spill]]  ;;  %vm756_vm5 = vcmp.lt.s32.totalorder %v3047_v26, 3  ;;  %vm778_vm6 = vcmp.lt.s32.totalorder %v3047_v26, 1 }
  0x36   :  { %v82_v17 = vld [vmem:[%s4108_s0 + $0x8] sm:$0x1]  ;;  %v81_v20 = vld [vmem:[%s4108_s0] sm:$0xff]  ;;  %s4113_s0 = smov 119  }
  0x3a   :  { %v2672_v58 = vld [vmem:[%s4109_s4] sm:$0xff]  }
  0x3b   :  { %v397_v59 = vld [vmem:[%s4110_s30 + $0x8] sm:$0xff]  ;;  %v396_v60 = vld [vmem:[%s4110_s30] sm:$0xff]  ;;  %2522 = vmatprep.mubr.msk.bf16.mxu1 %vm464_vm1, %v2672_v58  ;;  %v399_v61 = vld [vmem:[%s4110_s30 + $0x18] sm:$0xff] }
  0x3c   :  { %v398_v62 = vld [vmem:[%s4110_s30 + $0x10] sm:$0xff]  ;;  %v401_v63 = vld [vmem:[%s4110_s30 + $0x28] sm:$0xff]  ;;  %v400_v0 = vld [vmem:[%s4110_s30 + $0x20] sm:$0xff] }
  0x3d   :  { %v403_v1 = vld [vmem:[%s4110_s30 + $0x38] sm:$0xff]  ;;  %v402_v2 = vld [vmem:[%s4110_s30 + $0x30] sm:$0xff] }
  0x92   :  { %v93_v18 = vpop.permute.xlu0 %92  ;;  %v110_v31 = vpop.permute.xlu1 %109 }
  0x93   :  { %v96_v19 = vmul.f32 %v93_v18, %v82_v17  ;;  %v115_v33 = vrot.slane %v110_v31, %v3050_v29 }
  0x95   :  { %v98_v24 = vsel %vm97_vm0, %v96_v19, 0.0 }
  0x96   :  { %v88_v21 = vpop.permute.xlu0 %87  ;;  %v125_v36 = vpop.permute.xlu1 %124 }
  0x97   :  { %v95_v23 = vmul.f32 %v88_v21, %v81_v20 }
  0x99   :  { %v99_v25 = vadd.f32 %v98_v24, %v95_v23 }
  0x9a   :  { %v130_v37 = vpop.permute.xlu0 %129  ;;  %v153_v42 = vpop.permute.xlu1 %152 }
  0x9b   :  { %v100_v27 = vrot.slane %v99_v25, 4 }
  0x9d   :  { %v101_v28 = vadd.f32 %v100_v27, %v99_v25 }
  0x9e   :  { %v158_v43 = vpop.permute.xlu0 %157  ;;  %v135_v48 = vpop.permute.xlu1 %134 }
  0x9f   :  { %v102_v30 = vrot.slane %v101_v28, 2 }
  0xa1   :  { %v103_v32 = vadd.f32 %v102_v30, %v101_v28 }
  0xa2   :  { %v140_v49 = vpop.permute.xlu0 %139  ;;  %v163_v52 = vpop.permute.xlu1 %162 }
  0xa3   :  { %v104_v34 = vrot.slane %v103_v32, 1 }
  0xa5   :  { %v105_v35 = vadd.f32 %v104_v34, %v103_v32 }
  0xa6   :  { %v168_v53 = vpop.permute.xlu0 %167  ;;  %v3145_v4 = vpop.permute.xlu1 %360 }
  0xa7   :  { %v116_v38 = vadd.f32 %v115_v33, %v105_v35 }
  0xa9   :  { %v117_v39 = vmax.f32 %v116_v38, 0.0 }
  0xaa   :  { %v3147_v5 = vpop.permute.xlu0 %365  ;;  %v3149_v6 = vpop.permute.xlu1 %370 }
  0xab   :  { %v142_v40 = vmul.f32 %v125_v36, %v117_v39  ;;  %v143_v41 = vmul.f32 %v130_v37, %v117_v39  ;;  %v144_v50 = vmul.f32 %v135_v48, %v117_v39  ;;  %v145_v51 = vmul.f32 %v140_v49, %v117_v39 }
  0xad   :  { %v170_v44 = vadd.f32 %v153_v42, %v142_v40  ;;  %v171_v45 = vadd.f32 %v158_v43, %v143_v41  ;;  %v172_v54 = vadd.f32 %v163_v52, %v144_v50  ;;  %v173_v55 = vadd.f32 %v168_v53, %v145_v51 }
  0xae   :  { %v3151_v7 = vpop.permute.xlu0 %375 }
  0xaf   :  { %v3053_v46 = vmax.f32 %v170_v44, 0.0  ;;  %v3055_v47 = vmax.f32 %v171_v45, 0.0  ;;  %v3081_v56 = vmax.f32 %v172_v54, 0.0  ;;  %v3083_v57 = vmax.f32 %v173_v55, 0.0 }
  0xb1   :  { %180 = vrot.lane.b32.xlu0 %v3055_v47, %s2857_s25  ;;  %178 = vrot.lane.b32.xlu1 %v3053_v46, %s2857_s25 }
  0xb5   :  { %196 = vrot.lane.b32.xlu0 %v3055_v47, %s2858_s8  ;;  %194 = vrot.lane.b32.xlu1 %v3053_v46, %s2858_s8 }
  0xb9   :  { %238 = vrot.lane.b32.xlu0 %v3055_v47, %s2859_s1  ;;  %236 = vrot.lane.b32.xlu1 %v3053_v46, %s2859_s1 }
  0xbd   :  { %217 = vrot.lane.b32.xlu0 %v3055_v47, %s2860_s5  ;;  %215 = vrot.lane.b32.xlu1 %v3053_v46, %s2860_s5 }
  0xc1   :  { %268 = vrot.lane.b32.xlu0 %v3055_v47, %s4092_s26  ;;  %266 = vrot.lane.b32.xlu1 %v3053_v46, %s4092_s26 }
  0xc5   :  { %289 = vrot.lane.b32.xlu0 %v3055_v47, %s2862_s27  ;;  %287 = vrot.lane.b32.xlu1 %v3053_v46, %s2862_s27 }
  0xc9   :  { %306 = vrot.lane.b32.xlu0 %v3055_v47, %s2863_s28  ;;  %304 = vrot.lane.b32.xlu1 %v3053_v46, %s2863_s28 }
  0xcd   :  { %184 = vrot.lane.b32.xlu0 %v3083_v57, %s2857_s25  ;;  %182 = vrot.lane.b32.xlu1 %v3081_v56, %s2857_s25 }
  0xd1   :  { %200 = vrot.lane.b32.xlu0 %v3083_v57, %s2858_s8  ;;  %198 = vrot.lane.b32.xlu1 %v3081_v56, %s2858_s8 }
  0xd5   :  { %242 = vrot.lane.b32.xlu0 %v3083_v57, %s2859_s1  ;;  %240 = vrot.lane.b32.xlu1 %v3081_v56, %s2859_s1 }
  0xd9   :  { %327 = vrot.lane.b32.xlu0 %v3055_v47, %s4090_s6  ;;  %325 = vrot.lane.b32.xlu1 %v3053_v46, %s4090_s6 }
  0xdd   :  { %221 = vrot.lane.b32.xlu0 %v3083_v57, %s2860_s5  ;;  %219 = vrot.lane.b32.xlu1 %v3081_v56, %s2860_s5  ;;  %s2868_s5 = smov [#allocation3]  }
  0xe1   :  { %272 = vrot.lane.b32.xlu0 %v3083_v57, %s4092_s26  ;;  %270 = vrot.lane.b32.xlu1 %v3081_v56, %s4092_s26 }
  0xe5   :  { %293 = vrot.lane.b32.xlu0 %v3083_v57, %s2862_s27  ;;  %291 = vrot.lane.b32.xlu1 %v3081_v56, %s2862_s27  ;;  %s4111_s27 = sld [smem:[#allocation11_spill]] }
  0xe9   :  { %310 = vrot.lane.b32.xlu0 %v3083_v57, %s2863_s28  ;;  %308 = vrot.lane.b32.xlu1 %v3081_v56, %s2863_s28 }
  0xeb   :  { %v2250_v24 = vld [vmem:[%s4111_s27 + $0x68] sm:$0xff]  ;;  %v2249_v27 = vld [vmem:[%s4111_s27 + $0x60] sm:$0xff] }
  0xec   :  { %v2254_v25 = vld [vmem:[%s4111_s27 + $0x88] sm:$0xff]  ;;  %v2241_v30 = vld [vmem:[%s4111_s27 + $0x20] sm:$0xff] }
  0xed   :  { %331 = vrot.lane.b32.xlu0 %v3083_v57, %s4090_s6  ;;  %329 = vrot.lane.b32.xlu1 %v3081_v56, %s4090_s6  ;;  %v2242_v28 = vld [vmem:[%s4111_s27 + $0x28] sm:$0xff]  ;;  %v2253_v31 = vld [vmem:[%s4111_s27 + $0x80] sm:$0xff]  ;;  %v259_v48 = vmul.f32 %v2254_v25, %v3055_v47 }
  0xee   :  { %v187_v32 = vld [vmem:[%s4111_s27 + $0x8] sm:$0xff]  ;;  %v2257_v34 = vld [vmem:[%s4111_s27 + $0xa0] sm:$0xff]  ;;  %v258_v49 = vmul.f32 %v2253_v31, %v3053_v46 }
  0xef   :  { %v2258_v33 = vld [vmem:[%s4111_s27 + $0xa8] sm:$0xff]  ;;  %v186_v37 = vld [vmem:[%s4111_s27] sm:$0xff] }
  0xf0   :  { %v2246_v40 = vld [vmem:[%s4111_s27 + $0x48] sm:$0xff]  ;;  %v2245_v41 = vld [vmem:[%s4111_s27 + $0x40] sm:$0xff] }
  0xf1   :  { %411 = vperm.xlu0 %2610, %v397_v59   ;;  %406 = vperm.xlu1 %2611, %v396_v60   ;;  %v2266_v44 = vld [vmem:[%s4111_s27 + $0xe8] sm:$0xff]  ;;  %v2265_v45 = vld [vmem:[%s4111_s27 + $0xe0] sm:$0xff] }
  0xf2   :  { %v2262_v58 = vld [vmem:[%s4111_s27 + $0xc8] sm:$0xff]  ;;  %v2261_v59 = vld [vmem:[%s4111_s27 + $0xc0] sm:$0xff] }
  0xf5   :  { %421 = vperm.xlu0 %2610, %v399_v61   ;;  %416 = vperm.xlu1 %2611, %v398_v62  }
  0xf9   :  { %431 = vperm.xlu0 %2610, %v401_v63   ;;  %426 = vperm.xlu1 %2611, %v400_v0  }
  0xfd   :  { %441 = vperm.xlu0 %2610, %v403_v1   ;;  %436 = vperm.xlu1 %2611, %v402_v2   ;;  %v2270_v2 = vld [vmem:[%s4111_s27 + $0x108] sm:$0xff] }
 0x123   :  { %v181_v8 = vpop.permute.xlu0 %180  ;;  %v179_v9 = vpop.permute.xlu1 %178 }
 0x124   :  { %v191_v52 = vmul.f32 %v187_v32, %v181_v8  ;;  %v190_v53 = vmul.f32 %v186_v37, %v179_v9  ;;  %v2269_v8 = vld [vmem:[%s4111_s27 + $0x100] sm:$0xff] }
 0x127   :  { %v197_v10 = vpop.permute.xlu0 %196  ;;  %v195_v11 = vpop.permute.xlu1 %194 }
 0x128   :  { %v208_v42 = vmul.f32 %v2242_v28, %v197_v10  ;;  %v207_v43 = vmul.f32 %v2241_v30, %v195_v11 }
 0x12a   :  { %v212_v0 = vadd.f32 %v208_v42, %v191_v52  ;;  %v211_v1 = vadd.f32 %v207_v43, %v190_v53  ;;  %v2256_v42 = vld [vmem:[%s4111_s27 + $0x98] sm:$0xff]  ;;  %v2251_v43 = vld [vmem:[%s4111_s27 + $0x70] sm:$0xff] }
 0x12b   :  { %v239_v12 = vpop.permute.xlu0 %238  ;;  %v237_v13 = vpop.permute.xlu1 %236  ;;  %v188_v53 = vld [vmem:[%s4111_s27 + $0x10] sm:$0xff] }
 0x12c   :  { %v250_v38 = vmul.f32 %v2250_v24, %v239_v12  ;;  %v249_v39 = vmul.f32 %v2249_v27, %v237_v13 }
 0x12e   :  { %v263_v62 = vadd.f32 %v259_v48, %v250_v38  ;;  %v262_v47 = vadd.f32 %v258_v49, %v249_v39  ;;  %v189_v48 = vld [vmem:[%s4111_s27 + $0x18] sm:$0xff] }
 0x12f   :  { %v218_v14 = vpop.permute.xlu0 %217  ;;  %v216_v15 = vpop.permute.xlu1 %215  ;;  %v2260_v49 = vld [vmem:[%s4111_s27 + $0xb8] sm:$0xff] }
 0x130   :  { %v229_v54 = vmul.f32 %v2246_v40, %v218_v14  ;;  %v228_v55 = vmul.f32 %v2245_v41, %v216_v15  ;;  %v2252_v41 = vld [vmem:[%s4111_s27 + $0x78] sm:$0xff] }
 0x132   :  { %v233_v13 = vadd.f32 %v229_v54, %v212_v0  ;;  %v232_v14 = vadd.f32 %v228_v55, %v211_v1 }
 0x133   :  { %v269_v16 = vpop.permute.xlu0 %268  ;;  %v267_v17 = vpop.permute.xlu1 %266 }
 0x134   :  { %v280_v50 = vmul.f32 %v2258_v33, %v269_v16  ;;  %v279_v51 = vmul.f32 %v2257_v34, %v267_v17 }
 0x136   :  { %v284_v9 = vadd.f32 %v280_v50, %v263_v62  ;;  %v283_v10 = vadd.f32 %v279_v51, %v262_v47  ;;  %v2259_v50 = vld [vmem:[%s4111_s27 + $0xb0] sm:$0xff] }
 0x137   :  { %v290_v18 = vpop.permute.xlu0 %289  ;;  %v288_v19 = vpop.permute.xlu1 %287 }
 0x138   :  { %v301_v11 = vmul.f32 %v2262_v58, %v290_v18  ;;  %v300_v12 = vmul.f32 %v2261_v59, %v288_v19  ;;  %v347_v25 = vadd.f32 %v284_v9, %v233_v13  ;;  %v346_v27 = vadd.f32 %v283_v10, %v232_v14  ;;  %v2248_v58 = vld [vmem:[%s4111_s27 + $0x58] sm:$0xff]  ;;  %v2247_v59 = vld [vmem:[%s4111_s27 + $0x50] sm:$0xff] }
 0x139   :  { %v2264_v9 = vld [vmem:[%s4111_s27 + $0xd8] sm:$0xff]  ;;  %v2263_v10 = vld [vmem:[%s4111_s27 + $0xd0] sm:$0xff] }
 0x13b   :  { %v307_v20 = vpop.permute.xlu0 %306  ;;  %v305_v21 = vpop.permute.xlu1 %304 }
 0x13c   :  { %v318_v63 = vmul.f32 %v2266_v44, %v307_v20  ;;  %v317_v46 = vmul.f32 %v2265_v45, %v305_v21  ;;  %v2255_v44 = vld [vmem:[%s4111_s27 + $0x90] sm:$0xff] }
 0x13e   :  { %v322_v17 = vadd.f32 %v318_v63, %v301_v11  ;;  %v321_v20 = vadd.f32 %v317_v46, %v300_v12  ;;  %v2268_v63 = vld [vmem:[%s4111_s27 + $0xf8] sm:$0xff]  ;;  %v260_v46 = vmul.f32 %v2255_v44, %v3081_v56  ;;  %v2673_v44 = vld [vmem:[%s4109_s4 + $0x8] sm:$0xff]  }
 0x13f   :  { %v3153_v22 = vpop.permute.xlu0 %184  ;;  %v3155_v23 = vpop.permute.xlu1 %182 }
 0x143   :  { %v3184_v35 = vpop.permute.xlu0 %200  ;;  %v3186_v36 = vpop.permute.xlu1 %198 }
 0x147   :  { %v243_v60 = vpop.permute.xlu0 %242  ;;  %v241_v61 = vpop.permute.xlu1 %240 }
 0x148   :  { %v252_v54 = vmul.f32 %v2252_v41, %v243_v60  ;;  %v251_v55 = vmul.f32 %v2251_v43, %v241_v61  ;;  %v2267_v60 = vld [vmem:[%s4111_s27 + $0xf0] sm:$0xff]  ;;  %v261_v61 = vmul.f32 %v2256_v42, %v3083_v57 }
 0x14a   :  { %v265_v12 = vadd.f32 %v261_v61, %v252_v54  ;;  %v264_v56 = vadd.f32 %v260_v46, %v251_v55 }
 0x14b   :  { %v328_v15 = vpop.permute.xlu0 %327  ;;  %v326_v16 = vpop.permute.xlu1 %325 }
 0x14c   :  { %v339_v21 = vmul.f32 %v2270_v2, %v328_v15  ;;  %v338_v24 = vmul.f32 %v2269_v8, %v326_v16  ;;  %v193_v2 = vmul.f32 %v189_v48, %v3153_v22  ;;  %v2271_v16 = vld [vmem:[%s4111_s27 + $0x110] sm:$0xff] }
 0x14e   :  { %v343_v28 = vadd.f32 %v339_v21, %v322_v17  ;;  %v342_v30 = vadd.f32 %v338_v24, %v321_v20 }
 0x14f   :  { %v222_v31 = vpop.permute.xlu0 %221  ;;  %v220_v32 = vpop.permute.xlu1 %219 }
 0x150   :  { %v351_v33 = vadd.f32 %v347_v25, %v343_v28  ;;  %v350_v34 = vadd.f32 %v346_v27, %v342_v30  ;;  %v230_v8 = vmul.f32 %v2247_v59, %v220_v32 }
 0x152   :  { %v378_v37 = vadd.f32 %v3145_v4, %v350_v34  ;;  %v379_v18 = vadd.f32 %v3147_v5, %v351_v33  ;;  %v2244_v4 = vld [vmem:[%s4111_s27 + $0x38] sm:$0xff]  ;;  %v2243_v5 = vld [vmem:[%s4111_s27 + $0x30] sm:$0xff] }
 0x153   :  { %v273_v19 = vpop.permute.xlu0 %272  ;;  %v271_v38 = vpop.permute.xlu1 %270  ;;  %v210_v62 = vmul.f32 %v2244_v4, %v3184_v35  ;;  %v209_v47 = vmul.f32 %v2243_v5, %v3186_v36  ;;  %v192_v35 = vmul.f32 %v188_v53, %v3155_v23  ;;  %v231_v36 = vmul.f32 %v2248_v58, %v222_v31  ;;  %v2272_v23 = vld [vmem:[%s4111_s27 + $0x118] sm:$0xff] }
 0x154   :  { %v382_v39 = vmax.f32 %v378_v37, 0.0  ;;  %v383_v40 = vmax.f32 %v379_v18, 0.0  ;;  %v282_v0 = vmul.f32 %v2260_v49, %v273_v19  ;;  %v281_v1 = vmul.f32 %v2259_v50, %v271_v38 }
 0x155   :  { %v214_v15 = vadd.f32 %v210_v62, %v193_v2  ;;  %v213_v22 = vadd.f32 %v209_v47, %v192_v35 }
 0x156   :  { %v394_v45 = vpack.c.bf16 %v383_v40, %v382_v39  ;;  %v286_v17 = vadd.f32 %v282_v0, %v265_v12  ;;  %v285_v20 = vadd.f32 %v281_v1, %v264_v56 }
 0x157   :  { %v294_v51 = vpop.permute.xlu0 %293  ;;  %v292_v52 = vpop.permute.xlu1 %291  ;;  %v235_v25 = vadd.f32 %v231_v36, %v214_v15  ;;  %v234_v27 = vadd.f32 %v230_v8, %v213_v22 }
 0x158   :  { %2518 = vmatprep.subr.bf16.mxu1 %v394_v45  ;;  %v303_v21 = vmul.f32 %v2264_v9, %v294_v51  ;;  %v302_v24 = vmul.f32 %v2263_v10, %v292_v52 }
 0x159   :  { %2519 = vmatpush3.bf16.msra.mxu1 %v394_v45  ;;  %v349_v37 = vadd.f32 %v286_v17, %v235_v25  ;;  %v348_v18 = vadd.f32 %v285_v20, %v234_v27  ;;  %v2674_v45 = vld [vmem:[%s4109_s4 + $0x10] sm:$0xff]   ;;  %v622_v20 = vld [vmem:[%s4066_s9] sm:$0xff] }
 0x15b   :  { %v311_v11 = vpop.permute.xlu0 %310  ;;  %v309_v57 = vpop.permute.xlu1 %308 }
 0x15c   :  { %v320_v13 = vmul.f32 %v2268_v63, %v311_v11  ;;  %v319_v14 = vmul.f32 %v2267_v60, %v309_v57 }
 0x15e   :  { %v324_v31 = vadd.f32 %v320_v13, %v303_v21  ;;  %v323_v32 = vadd.f32 %v319_v14, %v302_v24 }
 0x15f   :  { %v332_v28 = vpop.permute.xlu0 %331  ;;  %v330_v30 = vpop.permute.xlu1 %329 }
 0x160   :  { %v341_v33 = vmul.f32 %v2272_v23, %v332_v28  ;;  %v340_v34 = vmul.f32 %v2271_v16, %v330_v30 }
 0x162   :  { %v345_v19 = vadd.f32 %v341_v33, %v324_v31  ;;  %v344_v38 = vadd.f32 %v340_v34, %v323_v32 }
 0x164   :  { %v353_v39 = vadd.f32 %v349_v37, %v345_v19  ;;  %v352_v40 = vadd.f32 %v348_v18, %v344_v38 }
 0x166   :  { %v380_v41 = vadd.f32 %v3149_v6, %v352_v40  ;;  %v381_v42 = vadd.f32 %v3151_v7, %v353_v39  ;;  %v2675_v6 = vld [vmem:[%s4109_s4 + $0x18] sm:$0xff]   ;;  %s4112_s4 = smov 127  }
 0x168   :  { %v384_v43 = vmax.f32 %v380_v41, 0.0  ;;  %v385_v4 = vmax.f32 %v381_v42, 0.0 }
 0x16a   :  { %v395_v5 = vpack.c.bf16 %v385_v4, %v384_v43 }
 0x16c   :  { %2520 = vmatprep.subr.bf16.mxu1 %v395_v5 }
 0x16d   :  { %2521 = vmatpush3.bf16.msra.mxu1 %v395_v5 }
 0x170   :  { %2523 = vmatmul.mubr.msk.bf16.vlgmr.msra.gmra.mrb[0].mxu1 %vm464_vm1, %v2673_v44  ;;  %v412_v7 = vpop.permute.xlu0 %411  ;;  %v407_v48 = vpop.permute.xlu1 %406 }
 0x171   :  { %2526 = vmatprep.mubr.msk.bf16.mxu1 %vm464_vm1, %v2674_v45 }
 0x174   :  { %v422_v53 = vpop.permute.xlu0 %421  ;;  %v417_v59 = vpop.permute.xlu1 %416 }
 0x178   :  { %2527 = vmatmul.mubr.msk.bf16.gmra.mrb[4].mxu1 %vm464_vm1, %v2675_v6  ;;  %v432_v0 = vpop.permute.xlu0 %431  ;;  %v427_v36 = vpop.permute.xlu1 %426 }
 0x179   :  { %2546 = vmatprep.mubr.f32.mxu1 %v622_v20 }
 0x17c   :  { %v442_v57 = vpop.permute.xlu0 %441  ;;  %v437_v13 = vpop.permute.xlu1 %436 }
 0x243   :  { %v2524_v49 = vpop.f32.mrb[0].mxu1 }
 0x244   :  { %v511_v50 = vpop.f32.mrb[1].mxu1  ;;  %v520_v62 = vadd.f32 %v2524_v49, %v417_v59 }
 0x245   :  { %v512_v51 = vadd.f32 %v511_v50, %v407_v48  ;;  %v2525_v52 = vpop.f32.mrb[2].mxu1 }
 0x246   :  { %v514_v54 = vpop.f32.mrb[3].mxu1  ;;  %v3293_v55 = vadd.f32 %v2525_v52, %v422_v53  ;;  %v544_v2 = vmax.f32 %v520_v62, 0.0 }
 0x247   :  { %v515_v58 = vadd.f32 %v514_v54, %v412_v7  ;;  %v542_v47 = vmax.f32 %v512_v51, 0.0 }
 0x248   :  { %v545_v60 = vmax.f32 %v3293_v55, 0.0 }
 0x249   :  { %v543_v63 = vmax.f32 %v515_v58, 0.0 }
 0x24a   :  { %v2627_v10 = vpack.i.bf16 %v545_v60, %v544_v2 }
 0x24b   :  { %v2528_v61 = vpop.f32.mrb[4].mxu1  ;;  %v2617_v46 = vpack.i.bf16 %v543_v63, %v542_v47 }
 0x24c   :  { %v527_v1 = vpop.f32.mrb[5].mxu1  ;;  %v3307_v14 = vadd.f32 %v2528_v61, %v437_v13 }
 0x24d   :  { %v2529_v35 = vpop.f32.mrb[6].mxu1  ;;  %2618 = vrot.lane.b32.xlu0 %v2617_v46, %s2863_s28  ;;  %2613 = vrot.lane.b32.xlu1 %v2617_v46, %s4112_s4  ;;  %v3300_v11 = vadd.f32 %v527_v1, %v427_v36 }
 0x24e   :  { %v530_v8 = vpop.f32.mrb[7].mxu1  ;;  %v3304_v12 = vadd.f32 %v2529_v35, %v442_v57  ;;  %v548_v16 = vmax.f32 %v3307_v14, 0.0  ;;  %v624_v14 = vld [vmem:[%s4066_s9 + $0x10] sm:$0xff] }
 0x24f   :  { %v3298_v9 = vadd.f32 %v530_v8, %v432_v0  ;;  %v546_v15 = vmax.f32 %v3300_v11, 0.0 }
 0x250   :  { %v549_v22 = vmax.f32 %v3304_v12, 0.0  ;;  %v623_v12 = vld [vmem:[%s4066_s9 + $0x8] sm:$0xff] }
 0x251   :  { %2628 = vrot.lane.b32.xlu0 %v2627_v10, %s4112_s4  ;;  %2623 = vrot.lane.b32.xlu1 %v2617_v46, %s4113_s0  ;;  %v547_v56 = vmax.f32 %v3298_v9, 0.0 }
 0x252   :  { %v2657_v17 = vpack.i.bf16 %v549_v22, %v548_v16 }
 0x253   :  { %v2647_v23 = vpack.i.bf16 %v547_v56, %v546_v15 }
 0x255   :  { %2638 = vrot.lane.b32.xlu0 %v2627_v10, %s4113_s0  ;;  %2633 = vrot.lane.b32.xlu1 %v2627_v10, %s2863_s28 }
 0x259   :  { %2648 = vrot.lane.b32.xlu0 %v2647_v23, %s2863_s28  ;;  %2643 = vrot.lane.b32.xlu1 %v2647_v23, %s4112_s4 }
 0x25d   :  { %2658 = vrot.lane.b32.xlu0 %v2657_v17, %s4112_s4  ;;  %2653 = vrot.lane.b32.xlu1 %v2647_v23, %s4113_s0 }
 0x261   :  { %2668 = vrot.lane.b32.xlu0 %v2657_v17, %s4113_s0  ;;  %2663 = vrot.lane.b32.xlu1 %v2657_v17, %s2863_s28 }
 0x2bf   :  { %v2619_v21 = vpop.permute.xlu0 %2618  ;;  %v2614_v24 = vpop.permute.xlu1 %2613 }
 0x2c0   :  { %v2616_v25 = vunpack.i.h.bf16 %v2614_v24  ;;  %v2615_v27 = vunpack.i.l.bf16 %v2614_v24  ;;  %v2621_v31 = vunpack.i.h.bf16 %v2619_v21  ;;  %v2620_v32 = vunpack.i.l.bf16 %v2619_v21 }
 0x2c2   :  { %v567_v28 = vmax.f32 %v543_v63, %v2616_v25  ;;  %v566_v30 = vmax.f32 %v542_v47, %v2615_v27 }
 0x2c3   :  { %v2629_v33 = vpop.permute.xlu0 %2628  ;;  %v2624_v34 = vpop.permute.xlu1 %2623 }
 0x2c4   :  { %v2631_v37 = vunpack.i.h.bf16 %v2629_v33  ;;  %v2630_v18 = vunpack.i.l.bf16 %v2629_v33  ;;  %v2626_v19 = vunpack.i.h.bf16 %v2624_v34  ;;  %v2625_v38 = vunpack.i.l.bf16 %v2624_v34  ;;  %v2678_v33 = vld [vmem:[%s4069_s12 + $0x10] sm:$0xff]   ;;  %v2679_v34 = vld [vmem:[%s4069_s12 + $0x18] sm:$0xff]  }
 0x2c5   :  { %v590_v39 = vmax.f32 %v566_v30, %v2620_v32  ;;  %v591_v40 = vmax.f32 %v567_v28, %v2621_v31  ;;  %v2677_v32 = vld [vmem:[%s4069_s12 + $0x8] sm:$0xff]  }
 0x2c6   :  { %v569_v5 = vmax.f32 %v545_v60, %v2631_v37  ;;  %v568_v44 = vmax.f32 %v544_v2, %v2630_v18  ;;  %v2294_v18 = vld [vmem:[%s4067_s10 + $0x88] sm:$0xff] }
 0x2c7   :  { %v614_v41 = vmax.f32 %v590_v39, %v2625_v38  ;;  %v615_v42 = vmax.f32 %v591_v40, %v2626_v19  ;;  %v2639_v43 = vpop.permute.xlu0 %2638  ;;  %v2634_v4 = vpop.permute.xlu1 %2633  ;;  %v2293_v40 = vld [vmem:[%s4067_s10 + $0x80] sm:$0xff] }
 0x2c8   :  { %v2636_v45 = vunpack.i.h.bf16 %v2634_v4  ;;  %v2635_v6 = vunpack.i.l.bf16 %v2634_v4  ;;  %v2641_v48 = vunpack.i.h.bf16 %v2639_v43  ;;  %v2640_v49 = vunpack.i.l.bf16 %v2639_v43 }
 0x2c9   :  { %v2575_v7 = vpack.c.bf16 %v615_v42, %v614_v41 }
 0x2ca   :  { %v593_v50 = vmax.f32 %v569_v5, %v2636_v45  ;;  %v592_v51 = vmax.f32 %v568_v44, %v2635_v6 }
 0x2cb   :  { %2576 = vmatprep.subr.bf16.mxu1 %v2575_v7  ;;  %v2649_v52 = vpop.permute.xlu0 %2648  ;;  %v2644_v53 = vpop.permute.xlu1 %2643 }
 0x2cc   :  { %v617_v54 = vmax.f32 %v593_v50, %v2641_v48  ;;  %v616_v55 = vmax.f32 %v592_v51, %v2640_v49  ;;  %2578 = vmatpush3.bf16.xpose.msra.mxu1 %v2575_v7  ;;  %v2646_v58 = vunpack.i.h.bf16 %v2644_v53  ;;  %v2645_v59 = vunpack.i.l.bf16 %v2644_v53  ;;  %v2296_v7 = vld [vmem:[%s4067_s10 + $0x98] sm:$0xff]  ;;  %v2295_v51 = vld [vmem:[%s4067_s10 + $0x90] sm:$0xff] }
 0x2cd   :  { %v2651_v47 = vunpack.i.h.bf16 %v2649_v52  ;;  %v2650_v63 = vunpack.i.l.bf16 %v2649_v52 }
 0x2ce   :  { %v2579_v62 = vpack.c.bf16 %v617_v54, %v616_v55  ;;  %v571_v60 = vmax.f32 %v547_v56, %v2646_v58  ;;  %v570_v61 = vmax.f32 %v546_v15, %v2645_v59 }
 0x2cf   :  { %v2659_v46 = vpop.permute.xlu0 %2658  ;;  %v2654_v0 = vpop.permute.xlu1 %2653 }
 0x2d0   :  { %v2661_v1 = vunpack.i.h.bf16 %v2659_v46  ;;  %v2660_v2 = vunpack.i.l.bf16 %v2659_v46  ;;  %v2656_v35 = vunpack.i.h.bf16 %v2654_v0  ;;  %v2655_v36 = vunpack.i.l.bf16 %v2654_v0  ;;  %2580 = vmatprep.subr.bf16.mxu1 %v2579_v62  ;;  %v725_v46 = vld [vmem:[%s4067_s10 + $0x18] sm:$0xff] }
 0x2d1   :  { %v594_v8 = vmax.f32 %v570_v61, %v2650_v63  ;;  %v595_v9 = vmax.f32 %v571_v60, %v2651_v47  ;;  %v2300_v60 = vld [vmem:[%s4067_s10 + $0xb8] sm:$0xff] }
 0x2d2   :  { %v573_v23 = vmax.f32 %v549_v22, %v2661_v1  ;;  %v572_v56 = vmax.f32 %v548_v16, %v2660_v2  ;;  %v625_v22 = vld [vmem:[%s4066_s9 + $0x18] sm:$0xff]  ;;  %v2676_v16 = vld [vmem:[%s4069_s12] sm:$0xff]  }
 0x2d3   :  { %v618_v10 = vmax.f32 %v594_v8, %v2655_v36  ;;  %v619_v11 = vmax.f32 %v595_v9, %v2656_v35  ;;  %v2669_v57 = vpop.permute.xlu0 %2668  ;;  %v2664_v13 = vpop.permute.xlu1 %2663  ;;  %2552 = vmatprep.subr.bf16.mxu0 %v2676_v16  ;;  %v2284_v1 = vld [vmem:[%s4067_s10 + $0x38] sm:$0xff]  ;;  %v2291_v8 = vld [vmem:[%s4067_s10 + $0x70] sm:$0xff] }
 0x2d4   :  { %v2666_v15 = vunpack.i.h.bf16 %v2664_v13  ;;  %v2665_v17 = vunpack.i.l.bf16 %v2664_v13  ;;  %2582 = vmatpush3.bf16.xpose.msra.mxu1 %v2579_v62  ;;  %v2671_v21 = vunpack.i.h.bf16 %v2669_v57  ;;  %v2670_v24 = vunpack.i.l.bf16 %v2669_v57  ;;  %2553 = vmatpush3.bf16.msra.mxu0 %v2676_v16  ;;  %v2288_v35 = vld [vmem:[%s4067_s10 + $0x58] sm:$0xff]  ;;  %v722_v16 = vld [vmem:[%s4067_s10] sm:$0xff] }
 0x2d5   :  { %v2583_v20 = vpack.c.bf16 %v619_v11, %v618_v10  ;;  %2554 = vmatprep.subr.bf16.mxu0 %v2677_v32 }
 0x2d6   :  { %v597_v25 = vmax.f32 %v573_v23, %v2666_v15  ;;  %v596_v27 = vmax.f32 %v572_v56, %v2665_v17  ;;  %v2292_v23 = vld [vmem:[%s4067_s10 + $0x78] sm:$0xff]  ;;  %v2299_v56 = vld [vmem:[%s4067_s10 + $0xb0] sm:$0xff] }
 0x2d7   :  { %2584 = vmatprep.subr.bf16.mxu1 %v2583_v20  ;;  %v2303_v15 = vld [vmem:[%s4067_s10 + $0xd0] sm:$0xff] }
 0x2d8   :  { %v621_v28 = vmax.f32 %v597_v25, %v2671_v21  ;;  %v620_v30 = vmax.f32 %v596_v27, %v2670_v24  ;;  %2555 = vmatpush3.bf16.msra.mxu0 %v2677_v32  ;;  %v2307_v27 = vld [vmem:[%s4067_s10 + $0xf0] sm:$0xff] }
 0x2d9   :  { %2556 = vmatprep.subr.bf16.mxu0 %v2678_v33 }
 0x2da   :  { %v2587_v31 = vpack.c.bf16 %v621_v28, %v620_v30  ;;  %v723_v28 = vld [vmem:[%s4067_s10 + $0x8] sm:$0xff]  ;;  %v724_v30 = vld [vmem:[%s4067_s10 + $0x10] sm:$0xff] }
 0x2dc   :  { %2586 = vmatpush3.bf16.xpose.msra.mxu1 %v2583_v20  ;;  %2557 = vmatpush3.bf16.msra.mxu0 %v2678_v33 }
 0x2dd   :  { %2588 = vmatprep.subr.bf16.mxu1 %v2587_v31  ;;  %2558 = vmatprep.subr.bf16.mxu0 %v2679_v34 }
 0x2e0   :  { %2559 = vmatpush3.bf16.msra.mxu0 %v2679_v34 }
 0x2e4   :  { %2590 = vmatpush3.bf16.xpose.msra.mxu1 %v2587_v31 }
 0x2eb   :  { %2547 = vmatmul.mubr.f32.vlgmr.msra.gmra.mrb[8].mxu1 %v623_v12 }
 0x2ec   :  { %2549 = vmatprep.mubr.f32.mxu1 %v624_v14 }
 0x2ef   :  { %2550 = vmatmul.mubr.f32.gmra.mrb[10].mxu1 %v625_v22 }
 0x3be   :  { %v3352_v37 = vpop.f32.mrb[8].mxu1 }
 0x3bf   :  { %v712_v19 = vrot.slane %v3352_v37, 3  ;;  %v731_v38 = vrot.slane %v3352_v37, 4  ;;  %v3362_v39 = vpop.f32.mrb[9].mxu1  ;;  %v753_v41 = vrot.slane %v3352_v37, 5  ;;  %v775_v42 = vrot.slane %v3352_v37, 7 }
 0x3c0   :  { %v711_v43 = vrot.slane %v3362_v39, 3  ;;  %v730_v4 = vrot.slane %v3362_v39, 4  ;;  %v3374_v5 = vmul.f32 %v3352_v37, %v2294_v18  ;;  %v806_v44 = vrot.slane %v3352_v37, 1 }
 0x3c1   :  { %v752_v45 = vrot.slane %v3362_v39, 5  ;;  %v774_v6 = vrot.slane %v3362_v39, 7  ;;  %v3383_v48 = vmul.f32 %v2293_v40, %v3362_v39  ;;  %v805_v49 = vrot.slane %v3362_v39, 1  ;;  %v2282_v40 = vld [vmem:[%s4067_s10 + $0x28] sm:$0xff] }
 0x3c2   :  { %v3386_v50 = vpop.f32.mrb[10].mxu1  ;;  %v3393_v52 = vsel %vm717_vm3, %v711_v43, %v712_v19  ;;  %v3401_v53 = vsel %vm734_vm4, %v730_v4, %v731_v38 }
 0x3c3   :  { %v714_v54 = vrot.slane %v3386_v50, 3  ;;  %v733_v55 = vrot.slane %v3386_v50, 4  ;;  %v755_v58 = vrot.slane %v3386_v50, 5  ;;  %v777_v59 = vrot.slane %v3386_v50, 7  ;;  %v3407_v62 = vpop.f32.mrb[11].mxu1 }
 0x3c4   :  { %v3410_v47 = vmul.f32 %v3386_v50, %v2296_v7  ;;  %v808_v63 = vrot.slane %v3386_v50, 1  ;;  %v713_v61 = vrot.slane %v3407_v62, 3  ;;  %v732_v0 = vrot.slane %v3407_v62, 4  ;;  %v2283_v7 = vld [vmem:[%s4067_s10 + $0x30] sm:$0xff]  ;;  %v2305_v50 = vld [vmem:[%s4067_s10 + $0xe0] sm:$0xff] }
 0x3c5   :  { %v754_v2 = vrot.slane %v3407_v62, 5  ;;  %v776_v36 = vrot.slane %v3407_v62, 7  ;;  %v799_v9 = vmul.f32 %v2295_v51, %v3407_v62  ;;  %v807_v10 = vrot.slane %v3407_v62, 1 }
 0x3c6   :  { %v813_v11 = vsel %vm809_vm2, %v808_v63, %v805_v49  ;;  %v718_v57 = vsel %vm717_vm3, %v713_v61, %v714_v54  ;;  %v735_v13 = vsel %vm734_vm4, %v732_v0, %v733_v55  ;;  %v3453_v17 = vsel %vm717_vm3, %v712_v19, %v713_v61  ;;  %v2281_v19 = vld [vmem:[%s4067_s10 + $0x20] sm:$0xff]  ;;  %v2287_v61 = vld [vmem:[%s4067_s10 + $0x50] sm:$0xff] }
 0x3c7   :  { %v3455_v20 = vmul.f32 %v2300_v60, %v813_v11  ;;  %v3457_v21 = vmul.f32 %v725_v46, %v718_v57  ;;  %v3459_v24 = vmul.f32 %v2284_v1, %v735_v13  ;;  %v3463_v25 = vsel %vm756_vm5, %v754_v2, %v755_v58 }
 0x3c8   :  { %v3475_v31 = vmul.f32 %v2288_v35, %v3463_v25  ;;  %v779_v12 = vsel %vm778_vm6, %v776_v36, %v777_v59  ;;  %v780_v14 = vsel %vm778_vm6, %v775_v42, %v776_v36  ;;  %v810_v22 = vsel %vm809_vm2, %v807_v10, %v808_v63 }
 0x3c9   :  { %v790_v32 = vmul.f32 %v2291_v8, %v780_v14  ;;  %v3490_v33 = vmul.f32 %v2292_v23, %v779_v12  ;;  %v821_v34 = vmul.f32 %v2299_v56, %v810_v22  ;;  %v3492_v18 = vmul.f32 %v2303_v15, %v718_v57  ;;  %v2297_v14 = vld [vmem:[%s4067_s10 + $0xa0] sm:$0xff] }
 0x3ca   :  { %v3503_v51 = vmul.f32 %v2307_v27, %v735_v13  ;;  %v721_v62 = vsel %vm717_vm3, %v714_v54, %v711_v43  ;;  %v727_v63 = vmul.f32 %v723_v28, %v3393_v52  ;;  %v728_v60 = vmul.f32 %v724_v30, %v3453_v17  ;;  %v2285_v54 = vld [vmem:[%s4067_s10 + $0x40] sm:$0xff]  ;;  %v2290_v13 = vld [vmem:[%s4067_s10 + $0x68] sm:$0xff] }
 0x3cb   :  { %v803_v46 = vadd.f32 %v799_v9, %v790_v32  ;;  %v726_v1 = vmul.f32 %v722_v16, %v721_v62  ;;  %v736_v35 = vsel %vm734_vm4, %v731_v38, %v732_v0  ;;  %v738_v43 = vsel %vm734_vm4, %v733_v55, %v730_v4  ;;  %v2286_v38 = vld [vmem:[%s4067_s10 + $0x48] sm:$0xff] }
 0x3cc   :  { %v744_v36 = vmul.f32 %v2281_v19, %v738_v43  ;;  %v745_v8 = vmul.f32 %v2282_v40, %v3401_v53  ;;  %v746_v11 = vmul.f32 %v2283_v7, %v736_v35  ;;  %v758_v9 = vsel %vm756_vm5, %v753_v41, %v754_v2  ;;  %v2289_v2 = vld [vmem:[%s4067_s10 + $0x60] sm:$0xff]  ;;  %v2306_v32 = vld [vmem:[%s4067_s10 + $0xe8] sm:$0xff] }
 0x3cd   :  { %v825_v0 = vadd.f32 %v821_v34, %v803_v46  ;;  %v759_v4 = vsel %vm756_vm5, %v752_v45, %v753_v41  ;;  %v760_v55 = vsel %vm756_vm5, %v755_v58, %v752_v45  ;;  %v768_v57 = vmul.f32 %v2287_v61, %v758_v9  ;;  %v2298_v41 = vld [vmem:[%s4067_s10 + $0xa8] sm:$0xff]  ;;  %v2301_v45 = vld [vmem:[%s4067_s10 + $0xc0] sm:$0xff]  ;;  %v2308_v34 = vld [vmem:[%s4067_s10 + $0xf8] sm:$0xff] }
 0x3ce   :  { %v748_v23 = vadd.f32 %v744_v36, %v726_v1  ;;  %v749_v56 = vadd.f32 %v745_v8, %v727_v63  ;;  %v750_v15 = vadd.f32 %v746_v11, %v728_v60  ;;  %v766_v27 = vmul.f32 %v2285_v54, %v760_v55  ;;  %v2309_v60 = vld [vmem:[%s4067_s10 + $0x100] sm:$0xff]  ;;  %v2310_v61 = vld [vmem:[%s4067_s10 + $0x108] sm:$0xff] }
 0x3cf   :  { %v767_v58 = vmul.f32 %v2286_v38, %v759_v4  ;;  %v781_v28 = vsel %vm778_vm6, %v774_v6, %v775_v42  ;;  %v782_v30 = vsel %vm778_vm6, %v777_v59, %v774_v6  ;;  %v811_v12 = vsel %vm809_vm2, %v806_v44, %v807_v10  ;;  %v2302_v42 = vld [vmem:[%s4067_s10 + $0xc8] sm:$0xff]  ;;  %v2304_v10 = vld [vmem:[%s4067_s10 + $0xd8] sm:$0xff] }
 0x3d0   :  { %v770_v22 = vadd.f32 %v766_v27, %v748_v23  ;;  %v772_v16 = vadd.f32 %v768_v57, %v750_v15  ;;  %v788_v6 = vmul.f32 %v2289_v2, %v782_v30  ;;  %v789_v59 = vmul.f32 %v2290_v13, %v781_v28 }
 0x3d1   :  { %v771_v19 = vadd.f32 %v767_v58, %v749_v56  ;;  %v812_v40 = vsel %vm809_vm2, %v805_v49, %v806_v44  ;;  %v820_v7 = vmul.f32 %v2298_v41, %v811_v12  ;;  %v832_v63 = vmul.f32 %v2301_v45, %v3393_v52  ;;  %v2312_v44 = vld [vmem:[%s4067_s10 + $0x118] sm:$0xff] }
 0x3d2   :  { %v801_v46 = vadd.f32 %v3383_v48, %v788_v6  ;;  %v802_v37 = vadd.f32 %v3374_v5, %v789_v59  ;;  %v819_v1 = vmul.f32 %v2297_v14, %v812_v40  ;;  %v833_v39 = vmul.f32 %v2302_v42, %v3453_v17  ;;  %v2311_v17 = vld [vmem:[%s4067_s10 + $0x110] sm:$0xff]  ;;  %v2682_v6 = vld [vmem:[%s4074_s17 + $0x4] ss:$8 sps:$4 sm:$0xff]   ;;  %v2314_v40 = vld [vmem:[%s4070_s13] ss:$0 sm:$0xff] }
 0x3d3   :  { %v835_v49 = vmul.f32 %v2304_v10, %v721_v62  ;;  %v841_v52 = vmul.f32 %v2305_v50, %v3401_v53  ;;  %v842_v54 = vmul.f32 %v2306_v32, %v736_v35  ;;  %v844_v36 = vmul.f32 %v2308_v34, %v738_v43  ;;  %v2685_v59 = vld [vmem:[%s4074_s17 + $0x14] ss:$8 sps:$4 sm:$0xff]   ;;  %1254 = vmatprep.subr.bf16.mxu0 %v2682_v6  ;;  %v2688_v10 = vld [vmem:[%s4074_s17 + $0x24] ss:$8 sps:$4 sm:$0xff]   ;;  %v2686_v32 = vld [vmem:[%s4074_s17 + $0x20] ss:$8 sps:$4 sm:$0xff]  }
 0x3d4   :  { %v823_v8 = vadd.f32 %v819_v1, %v801_v46  ;;  %v824_v11 = vadd.f32 %v820_v7, %v802_v37  ;;  %v854_v38 = vmul.f32 %v2309_v60, %v759_v4  ;;  %v855_v57 = vmul.f32 %v2310_v61, %v758_v9  ;;  %v2691_v34 = vld [vmem:[%s4074_s17 + $0x34] ss:$8 sps:$4 sm:$0xff]   ;;  %v2694_v6 = vld [vmem:[%s4074_s17 + $0x44] ss:$8 sps:$4 sm:$0xff]  }
 0x3d5   :  { %v845_v2 = vadd.f32 %v841_v52, %v832_v63  ;;  %v846_v48 = vadd.f32 %v842_v54, %v833_v39  ;;  %v857_v13 = vmul.f32 %v2312_v44, %v760_v55  ;;  %v751_v5 = vadd.f32 %v3459_v24, %v3457_v21  ;;  %v2313_v21 = vld [vmem:[%s4068_s11] ss:$0 sm:$0xff] }
 0x3d6   :  { %v862_v23 = vadd.f32 %v823_v8, %v770_v22  ;;  %v863_v62 = vadd.f32 %v824_v11, %v771_v19  ;;  %v804_v53 = vadd.f32 %v3410_v47, %v3490_v33  ;;  %v847_v35 = vadd.f32 %v3503_v51, %v3492_v18  ;;  %v2689_v19 = vld [vmem:[%s4074_s17 + $0x30] ss:$8 sps:$4 sm:$0xff]  }
 0x3d7   :  { %v858_v43 = vadd.f32 %v854_v38, %v845_v2  ;;  %v859_v9 = vadd.f32 %v855_v57, %v846_v48  ;;  %v773_v4 = vadd.f32 %v3475_v31, %v751_v5  ;;  %v848_v55 = vadd.f32 %v844_v36, %v835_v49 }
 0x3d8   :  { %v826_v24 = vadd.f32 %v3455_v20, %v804_v53  ;;  %v856_v56 = vmul.f32 %v2311_v17, %v3463_v25  ;;  %v864_v15 = vadd.f32 %v825_v0, %v772_v16  ;;  %v2865_v0 = vmov 0.0|0.0   ;;  %v2680_v16 = vld [vmem:[%s4074_s17] ss:$8 sps:$4 sm:$0xff]  }
 0x3d9   :  { %v866_v27 = vadd.f32 %v862_v23, %v858_v43  ;;  %v867_v41 = vadd.f32 %v863_v62, %v859_v9  ;;  %v861_v47 = vadd.f32 %v857_v13, %v848_v55  ;;  %2591 = vmatprep.subr.bf16.mxu1 %v2865_v0  ;;  %v2867_v22 = vmov 0.0  }
 0x3da   :  { %v860_v33 = vadd.f32 %v856_v56, %v847_v35  ;;  %v865_v45 = vadd.f32 %v826_v24, %v773_v4  ;;  %2572 = vmatprep.mubr.msk.f32.mxu1 %vm2866_vm8, %v2867_v22 }
 0x3db   :  { %v877_v18 = vadd.f32 %v2313_v21, %v866_v27  ;;  %v878_v51 = vadd.f32 %v2313_v21, %v867_v41 }
 0x3dc   :  { %v868_v58 = vadd.f32 %v864_v15, %v860_v33  ;;  %v869_v28 = vadd.f32 %v865_v45, %v861_v47 }
 0x3dd   :  { %v881_v31 = vmax.f32 %v877_v18, 0.0  ;;  %v882_v30 = vmax.f32 %v878_v51, 0.0 }
 0x3de   :  { %v879_v12 = vadd.f32 %v2313_v21, %v868_v58  ;;  %v880_v14 = vadd.f32 %v2313_v21, %v869_v28 }
 0x3df   :  { %v885_v42 = vpack.c.bf16 %v882_v30, %v881_v31 }
 0x3e0   :  { %v883_v50 = vmax.f32 %v879_v12, 0.0  ;;  %v884_v20 = vmax.f32 %v880_v14, 0.0 }
 0x3e1   :  { %2560 = vmatprep.mubr.msk.bf16.mxu0 %vm926_vm7, %v885_v42 }
 0x3e2   :  { %v886_v25 = vpack.c.bf16 %v884_v20, %v883_v50 }
 0x3e4   :  { %2561 = vmatmul.mubr.msk.bf16.vlgmr.msra.gmra.mrb[0].mxu0 %vm926_vm7, %v886_v25  ;;  %v1022_v25 = vld [vmem:[%s4071_s14] sm:$0xff]  ;;  %s2233_s14 = sshll.u32 %s2868_s5, 4  ;;  %s2234_s14 = int_to_ptr.vmem [resolvable:$true] %s2233_s14 }
 0x3e5   :  { %1286 = vmatprep.mubr.bf16.mxu0 %v2856_v3  ;;  %1255 = vmatpush1.bf16.msra.mxu0 %v2680_v16  ;;  %v2683_v3 = vld [vmem:[%s4074_s17 + $0x10] ss:$8 sps:$4 sm:$0xff]   ;;  %v2692_v16 = vld [vmem:[%s4074_s17 + $0x40] ss:$8 sps:$4 sm:$0xff]   ;;  %s2832_s7 = scalar_lea.vmem %s2234_s14, 32  ;;  %p2837_p1 = scmp.lt.s32.totalorder %s2234_s14, %s2234_s14 }
 0x3e6   :  { %1256 = vmatprep.subr.bf16.mxu0 %v2685_v59  ;;  %v2695_v59 = vld [vmem:[%s4074_s17 + $0x50] ss:$8 sps:$4 sm:$0xff]   ;;  %p2833_p0 = scmp.ne.s32.totalorder %s2234_s14, %s2832_s7  ;;  %p2838_p2 = scmp.lt.s32.totalorder %s2832_s7, %s2832_s7 }
 0x3e8   :  { %p2839_p3 = por %p2838_p2, %p2837_p1 }
 0x3e9   :  { %1257 = vmatpush1.bf16.msra.mxu0 %v2683_v3  ;;  %v2698_v3 = vld [vmem:[%s4074_s17 + $0x60] ss:$8 sps:$4 sm:$0xff]  }
 0x3ea   :  { %1258 = vmatprep.subr.bf16.mxu0 %v2688_v10  ;;  %v2703_v10 = vld [vmem:[%s4074_s17 + $0x74] ss:$8 sps:$4 sm:$0xff]   ;;  %p2840_p4 = pnand %p2839_p3, %p2833_p0 }
 0x3ed   :  { %1259 = vmatpush1.bf16.msra.mxu0 %v2686_v32  ;;  %v2701_v32 = vld [vmem:[%s4074_s17 + $0x70] ss:$8 sps:$4 sm:$0xff]  }
 0x3ee   :  { %1260 = vmatprep.subr.bf16.mxu0 %v2691_v34  ;;  %v2325_v34 = vld [vmem:[%s4072_s15 + $0x20] sm:$0xff] }
 0x3f1   :  { %1261 = vmatpush1.bf16.msra.mxu0 %v2689_v19 }
 0x3f2   :  { %1262 = vmatprep.subr.bf16.mxu0 %v2694_v6  ;;  %v2755_v6 = vld [vmem:[%s4077_s20 + $0x108] ss:$16 sps:$4 sm:$0xff]  }
 0x3f5   :  { %1263 = vmatpush1.bf16.msra.mxu0 %v2692_v16  ;;  %v2757_v16 = vld [vmem:[%s4077_s20 + $0x10c] ss:$16 sps:$4 sm:$0xff]  }
 0x4b7   :  { %v2562_v7 = vpop.f32.mrb[0].mxu0 }
 0x4b8   :  { %v976_v63 = vadd.f32 %v2562_v7, %v2314_v40  ;;  %v967_v60 = vpop.f32.mrb[1].mxu0  ;;  %v2322_v7 = vld [vmem:[%s4072_s15 + $0x8] sm:$0xff] }
 0x4b9   :  { %v968_v61 = vadd.f32 %v2314_v40, %v967_v60  ;;  %v2563_v46 = vpop.f32.mrb[2].mxu0 }
 0x4ba   :  { %v984_v37 = vmax.f32 %v976_v63, 0.0  ;;  %v979_v1 = vadd.f32 %v2563_v46, %v2314_v40  ;;  %v970_v39 = vpop.f32.mrb[3].mxu0  ;;  %v2324_v63 = vld [vmem:[%s4072_s15 + $0x18] sm:$0xff] }
 0x4bb   :  { %v982_v44 = vmax.f32 %v968_v61, 0.0  ;;  %v971_v49 = vadd.f32 %v2314_v40, %v970_v39  ;;  %v1097_v40 = vld [vmem:[%s4072_s15] sm:$0xff]  ;;  %v2328_v39 = vld [vmem:[%s4072_s15 + $0x38] sm:$0xff] }
 0x4bc   :  { %v988_v52 = vrot.slane %v984_v37, 1  ;;  %v985_v54 = vmax.f32 %v979_v1, 0.0  ;;  %v1000_v36 = vrot.slane %v984_v37, 4  ;;  %v1012_v57 = vrot.slane %v984_v37, 5  ;;  %v2327_v1 = vld [vmem:[%s4072_s15 + $0x30] sm:$0xff] }
 0x4bd   :  { %v986_v8 = vrot.slane %v982_v44, 1  ;;  %v998_v11 = vrot.slane %v982_v44, 4  ;;  %v983_v38 = vmax.f32 %v971_v49, 0.0  ;;  %v1010_v2 = vrot.slane %v982_v44, 5 }
 0x4be   :  { %v989_v48 = vrot.slane %v985_v54, 1  ;;  %v1001_v13 = vrot.slane %v985_v54, 4  ;;  %v1013_v5 = vrot.slane %v985_v54, 5 }
 0x4bf   :  { %v987_v17 = vrot.slane %v983_v38, 1  ;;  %v999_v23 = vrot.slane %v983_v38, 4  ;;  %v1011_v62 = vrot.slane %v983_v38, 5 }
 0x4c0   :  { %v990_v53 = vsel %vm809_vm2, %v988_v52, %v989_v48  ;;  %v993_v35 = vsel %vm809_vm2, %v989_v48, %v986_v8  ;;  %v1005_v43 = vsel %vm734_vm4, %v1001_v13, %v998_v11  ;;  %v1002_v9 = vsel %vm734_vm4, %v1000_v36, %v1001_v13  ;;  %v2329_v13 = vld [vmem:[%s4072_s15 + $0x40] sm:$0xff] }
 0x4c1   :  { %v997_v4 = vmax.f32 %v985_v54, %v993_v35  ;;  %v991_v55 = vsel %vm809_vm2, %v987_v17, %v988_v52  ;;  %v992_v21 = vsel %vm809_vm2, %v986_v8, %v987_v17  ;;  %v1003_v24 = vsel %vm734_vm4, %v999_v23, %v1000_v36  ;;  %v2323_v54 = vld [vmem:[%s4072_s15 + $0x10] sm:$0xff]  ;;  %v2326_v36 = vld [vmem:[%s4072_s15 + $0x28] sm:$0xff] }
 0x4c2   :  { %v995_v56 = vmax.f32 %v983_v38, %v991_v55  ;;  %v994_v15 = vmax.f32 %v982_v44, %v992_v21  ;;  %v1004_v27 = vsel %vm734_vm4, %v998_v11, %v999_v23  ;;  %v1015_v41 = vsel %vm756_vm5, %v1011_v62, %v1012_v57  ;;  %v2330_v21 = vld [vmem:[%s4073_s16] ss:$0 sm:$0xff] }
 0x4c3   :  { %v1009_v47 = vmax.f32 %v997_v4, %v1005_v43  ;;  %v1016_v33 = vsel %vm756_vm5, %v1010_v2, %v1011_v62  ;;  %v996_v45 = vmax.f32 %v984_v37, %v990_v53  ;;  %v1014_v18 = vsel %vm756_vm5, %v1012_v57, %v1013_v5 }
 0x4c4   :  { %v1007_v51 = vmax.f32 %v995_v56, %v1003_v24  ;;  %v1006_v58 = vmax.f32 %v994_v15, %v1004_v27  ;;  %v1017_v28 = vsel %vm756_vm5, %v1013_v5, %v1010_v2 }
 0x4c5   :  { %v1008_v31 = vmax.f32 %v996_v45, %v1002_v9  ;;  %v1021_v30 = vmax.f32 %v1009_v47, %v1017_v28  ;;  %v2709_v47 = vld [vmem:[%s4077_s20 + $0xc] ss:$16 sps:$4 sm:$0xff]   ;;  %v2713_v45 = vld [vmem:[%s4077_s20 + $0x28] ss:$16 sps:$4 sm:$0xff]  }
 0x4c6   :  { %v1018_v12 = vmax.f32 %v1006_v58, %v1016_v33  ;;  %v1019_v14 = vmax.f32 %v1007_v51, %v1015_v41  ;;  %v2707_v41 = vld [vmem:[%s4077_s20 + $0x8] ss:$16 sps:$4 sm:$0xff]   ;;  %v2715_v33 = vld [vmem:[%s4077_s20 + $0x2c] ss:$16 sps:$4 sm:$0xff]  }
 0x4c7   :  { %v1020_v42 = vmax.f32 %v1008_v31, %v1014_v18  ;;  %v2721_v18 = vld [vmem:[%s4077_s20 + $0x4c] ss:$16 sps:$4 sm:$0xff]   ;;  %v2719_v51 = vld [vmem:[%s4077_s20 + $0x48] ss:$16 sps:$4 sm:$0xff]  }
 0x4c8   :  { %v2592_v50 = vpack.c.bf16 %v1019_v14, %v1018_v12  ;;  %v2727_v58 = vld [vmem:[%s4077_s20 + $0x6c] ss:$16 sps:$4 sm:$0xff]   ;;  %v2725_v28 = vld [vmem:[%s4077_s20 + $0x68] ss:$16 sps:$4 sm:$0xff]  }
 0x4c9   :  { %v2595_v20 = vpack.c.bf16 %v1021_v30, %v1020_v42  ;;  %v2733_v31 = vld [vmem:[%s4077_s20 + $0x8c] ss:$16 sps:$4 sm:$0xff]   ;;  %v2731_v30 = vld [vmem:[%s4077_s20 + $0x88] ss:$16 sps:$4 sm:$0xff]  }
 0x4ca   :  { %2593 = vmatpush3.bf16.msra.mxu1 %v2592_v50  ;;  %v2739_v12 = vld [vmem:[%s4077_s20 + $0xac] ss:$16 sps:$4 sm:$0xff]   ;;  %v2737_v14 = vld [vmem:[%s4077_s20 + $0xa8] ss:$16 sps:$4 sm:$0xff]  }
 0x4cb   :  { %2594 = vmatprep.subr.bf16.mxu1 %v2865_v0  ;;  %v2697_v0 = vld [vmem:[%s4074_s17 + $0x54] ss:$8 sps:$4 sm:$0xff]   ;;  %v2743_v50 = vld [vmem:[%s4077_s20 + $0xc8] ss:$16 sps:$4 sm:$0xff]  }
 0x4cc   :  { %1264 = vmatprep.subr.bf16.mxu0 %v2697_v0  ;;  %v2745_v42 = vld [vmem:[%s4077_s20 + $0xcc] ss:$16 sps:$4 sm:$0xff]  }
 0x4cd   :  { %1265 = vmatpush1.bf16.msra.mxu0 %v2695_v59  ;;  %v2763_v0 = vld [vmem:[%s4077_s20 + $0x12c] ss:$16 sps:$4 sm:$0xff]   ;;  %v2761_v59 = vld [vmem:[%s4077_s20 + $0x128] ss:$16 sps:$4 sm:$0xff]  }
 0x4ce   :  { %2596 = vmatpush3.bf16.msra.mxu1 %v2595_v20  ;;  %v2751_v20 = vld [vmem:[%s4077_s20 + $0xec] ss:$16 sps:$4 sm:$0xff]  }
 0x4d1   :  { %2573 = vmatmul.mubr.msk.f32.vlgmr.msra.gmra.mrb[12].mxu1 %vm464_vm1, %v1022_v25  ;;  %v2749_v25 = vld [vmem:[%s4077_s20 + $0xe8] ss:$16 sps:$4 sm:$0xff]  }
 0x4d2   :  { %1378 = vmatprep.mubr.f32.mxu1 %v2867_v22  ;;  %v2700_v22 = vld [vmem:[%s4074_s17 + $0x64] ss:$8 sps:$4 sm:$0xff]  }
 0x4d3   :  { %1266 = vmatprep.subr.bf16.mxu0 %v2700_v22  ;;  %v2769_v22 = vld [vmem:[%s4077_s20 + $0x14c] ss:$16 sps:$4 sm:$0xff]  }
 0x4d4   :  { %1267 = vmatpush1.bf16.msra.mxu0 %v2698_v3  ;;  %v2767_v3 = vld [vmem:[%s4077_s20 + $0x148] ss:$16 sps:$4 sm:$0xff]  }
 0x4d5   :  { %1268 = vmatprep.subr.bf16.mxu0 %v2703_v10  ;;  %v2775_v10 = vld [vmem:[%s4077_s20 + $0x16c] ss:$16 sps:$4 sm:$0xff]  }
 0x4d8   :  { %1269 = vmatpush1.bf16.msra.mxu0 %v2701_v32  ;;  %v2773_v32 = vld [vmem:[%s4077_s20 + $0x168] ss:$16 sps:$4 sm:$0xff]  }
 0x4d9   :  { %1834 = vmatprep.subr.bf16.mxu0 %v2709_v47  ;;  %v2730_v47 = vld [vmem:[%s4077_s20 + $0x84] ss:$16 sps:$4 sm:$0xff]  }
 0x5a4   :  { %v1092_v19 = vpop.f32.mrb[12].mxu1 }
 0x5a5   :  { %v1096_v60 = vrot.slane %v1092_v19, 5  ;;  %v1099_v61 = vrot.slane %v1092_v19, 6  ;;  %v1104_v46 = vrot.slane %v1092_v19, 7  ;;  %v2574_v37 = vpop.f32.mrb[13].mxu1  ;;  %v1114_v44 = vmul.f32 %v2325_v34, %v1092_v19  ;;  %v2781_v34 = vld [vmem:[%s4077_s20 + $0x18c] ss:$16 sps:$4 sm:$0xff]  }
 0x5a6   :  { %v1116_v49 = vrot.slane %v1092_v19, 1  ;;  %v1124_v52 = vrot.slane %v1092_v19, 2  ;;  %v1129_v57 = vrot.slane %v1092_v19, 3  ;;  %v2779_v19 = vld [vmem:[%s4077_s20 + $0x188] ss:$16 sps:$4 sm:$0xff]  }
 0x5a7   :  { %v1098_v8 = vmul.f32 %v1097_v40, %v1096_v60  ;;  %v1102_v11 = vmul.f32 %v2322_v7, %v1099_v61  ;;  %v1111_v38 = vmul.f32 %v2324_v63, %v1104_v46  ;;  %v1107_v17 = vmul.f32 %v2323_v54, %v1104_v46  ;;  %v2787_v40 = vld [vmem:[%s4077_s20 + $0x1ac] ss:$16 sps:$4 sm:$0xff]   ;;  %v2785_v7 = vld [vmem:[%s4077_s20 + $0x1a8] ss:$16 sps:$4 sm:$0xff]   ;;  %v1162_v61 = vld [vmem:[%s4075_s18] sm:$0x3] }
 0x5a8   :  { %v1123_v2 = vmul.f32 %v2327_v1, %v1116_v49  ;;  %v1127_v48 = vmul.f32 %v2328_v39, %v1124_v52  ;;  %v1119_v62 = vmul.f32 %v2326_v36, %v1116_v49  ;;  %v1132_v9 = vmul.f32 %v2329_v13, %v1129_v57  ;;  %v2793_v63 = vld [vmem:[%s4077_s20 + $0x1cc] ss:$16 sps:$4 sm:$0xff]   ;;  %v2791_v60 = vld [vmem:[%s4077_s20 + $0x1c8] ss:$16 sps:$4 sm:$0xff]  }
 0x5a9   :  { %v1103_v5 = vadd.f32 %v1102_v11, %v1098_v8  ;;  %v1115_v23 = vadd.f32 %v1114_v44, %v1111_v38  ;;  %v1170_v46 = vsub.s32 1, %v3047_v26  ;;  %v1167_v37 = vrot.slane %v1162_v61, %v3050_v29 }
 0x5aa   :  { %v1128_v53 = vadd.f32 %v1127_v48, %v1123_v2 }
 0x5ab   :  { %v1108_v35 = vadd.f32 %v1107_v17, %v1103_v5  ;;  %v1120_v43 = vadd.f32 %v1119_v62, %v1115_v23  ;;  %v1171_v1 = vrot.slane %v1162_v61, %v1170_v46 }
 0x5ac   :  { %v1133_v4 = vadd.f32 %v1132_v9, %v1128_v53 }
 0x5ad   :  { %v1134_v55 = vadd.f32 %v1120_v43, %v1108_v35  ;;  %v2706_v43 = vld [vmem:[%s4077_s20 + $0x4] ss:$16 sps:$4 sm:$0xff]  }
 0x5af   :  { %v1135_v24 = vadd.f32 %v1134_v55, %v1133_v4  ;;  %v1309_v4 = vld [vmem:[%s4076_s19] sm:$0x3] }
 0x5b0   :  { %v2704_v55 = vld [vmem:[%s4077_s20] ss:$16 sps:$4 sm:$0xff]  }
 0x5b1   :  { %v1143_v56 = vadd.f32 %v2330_v21, %v1135_v24  ;;  %v2712_v21 = vld [vmem:[%s4077_s20 + $0x24] ss:$16 sps:$4 sm:$0xff]   ;;  %v2710_v24 = vld [vmem:[%s4077_s20 + $0x20] ss:$16 sps:$4 sm:$0xff]  }
 0x5b3   :  { %v1144_v15 = vmax.f32 %v1143_v56, 0.0  ;;  %v2718_v56 = vld [vmem:[%s4077_s20 + $0x44] ss:$16 sps:$4 sm:$0xff]  }
 0x5b5   :  { %v1145_v27 = vpack.c.bf16 %v1144_v15, %v1144_v15  ;;  %v2716_v15 = vld [vmem:[%s4077_s20 + $0x40] ss:$16 sps:$4 sm:$0xff]  }
 0x5b7   :  { %1287 = vmatmul.mubr.bf16.vlgmr.msra.gmra.mrb[4].mxu0 %v1145_v27  ;;  %v2724_v27 = vld [vmem:[%s4077_s20 + $0x64] ss:$16 sps:$4 sm:$0xff]  }
 0x5b8   :  { %1835 = vmatpush1.bf16.msra.mxu0 %v2707_v41  ;;  %v2722_v41 = vld [vmem:[%s4077_s20 + $0x60] ss:$16 sps:$4 sm:$0xff]  }
 0x5b9   :  { %1836 = vmatprep.subr.bf16.mxu0 %v2715_v33  ;;  %v2728_v33 = vld [vmem:[%s4077_s20 + $0x80] ss:$16 sps:$4 sm:$0xff]  }
 0x5bc   :  { %1837 = vmatpush1.bf16.msra.mxu0 %v2713_v45  ;;  %v2736_v45 = vld [vmem:[%s4077_s20 + $0xa4] ss:$16 sps:$4 sm:$0xff]  }
 0x5bd   :  { %1838 = vmatprep.subr.bf16.mxu0 %v2721_v18  ;;  %v2734_v18 = vld [vmem:[%s4077_s20 + $0xa0] ss:$16 sps:$4 sm:$0xff]  }
 0x5c0   :  { %1839 = vmatpush1.bf16.msra.mxu0 %v2719_v51  ;;  %v2742_v51 = vld [vmem:[%s4077_s20 + $0xc4] ss:$16 sps:$4 sm:$0xff]  }
 0x5c1   :  { %1840 = vmatprep.subr.bf16.mxu0 %v2727_v58  ;;  %v2740_v58 = vld [vmem:[%s4077_s20 + $0xc0] ss:$16 sps:$4 sm:$0xff]  }
 0x5c4   :  { %1841 = vmatpush1.bf16.msra.mxu0 %v2725_v28  ;;  %v2748_v28 = vld [vmem:[%s4077_s20 + $0xe4] ss:$16 sps:$4 sm:$0xff]  }
 0x5c5   :  { %1842 = vmatprep.subr.bf16.mxu0 %v2733_v31  ;;  %v2746_v31 = vld [vmem:[%s4077_s20 + $0xe0] ss:$16 sps:$4 sm:$0xff]  }
 0x5c8   :  { %1843 = vmatpush1.bf16.msra.mxu0 %v2731_v30  ;;  %v2754_v30 = vld [vmem:[%s4077_s20 + $0x104] ss:$16 sps:$4 sm:$0xff]  }
 0x5c9   :  { %1844 = vmatprep.subr.bf16.mxu0 %v2739_v12  ;;  %v2752_v12 = vld [vmem:[%s4077_s20 + $0x100] ss:$16 sps:$4 sm:$0xff]  }
 0x5cc   :  { %1845 = vmatpush1.bf16.msra.mxu0 %v2737_v14  ;;  %v2760_v14 = vld [vmem:[%s4077_s20 + $0x124] ss:$16 sps:$4 sm:$0xff]  }
 0x5cd   :  { %1846 = vmatprep.subr.bf16.mxu0 %v2745_v42  ;;  %v2758_v42 = vld [vmem:[%s4077_s20 + $0x120] ss:$16 sps:$4 sm:$0xff]  }
 0x5d0   :  { %1847 = vmatpush1.bf16.msra.mxu0 %v2743_v50  ;;  %v2766_v50 = vld [vmem:[%s4077_s20 + $0x144] ss:$16 sps:$4 sm:$0xff]  }
 0x5d1   :  { %1848 = vmatprep.subr.bf16.mxu0 %v2751_v20  ;;  %v2764_v20 = vld [vmem:[%s4077_s20 + $0x140] ss:$16 sps:$4 sm:$0xff]  }
 0x5d4   :  { %1849 = vmatpush1.bf16.msra.mxu0 %v2749_v25  ;;  %v2772_v25 = vld [vmem:[%s4077_s20 + $0x164] ss:$16 sps:$4 sm:$0xff]  }
 0x5d5   :  { %1850 = vmatprep.subr.bf16.mxu0 %v2757_v16  ;;  %v2770_v16 = vld [vmem:[%s4077_s20 + $0x160] ss:$16 sps:$4 sm:$0xff]  }
 0x5d8   :  { %1851 = vmatpush1.bf16.msra.mxu0 %v2755_v6  ;;  %v2778_v6 = vld [vmem:[%s4077_s20 + $0x184] ss:$16 sps:$4 sm:$0xff]  }
 0x5d9   :  { %1852 = vmatprep.subr.bf16.mxu0 %v2763_v0  ;;  %v2776_v0 = vld [vmem:[%s4077_s20 + $0x180] ss:$16 sps:$4 sm:$0xff]  }
 0x5dc   :  { %1853 = vmatpush1.bf16.msra.mxu0 %v2761_v59  ;;  %v2784_v59 = vld [vmem:[%s4077_s20 + $0x1a4] ss:$16 sps:$4 sm:$0xff]  }
 0x5dd   :  { %1854 = vmatprep.subr.bf16.mxu0 %v2769_v22  ;;  %v2782_v22 = vld [vmem:[%s4077_s20 + $0x1a0] ss:$16 sps:$4 sm:$0xff]  }
 0x5e0   :  { %1855 = vmatpush1.bf16.msra.mxu0 %v2767_v3  ;;  %v2790_v3 = vld [vmem:[%s4077_s20 + $0x1c4] ss:$16 sps:$4 sm:$0xff]  }
 0x5e1   :  { %1856 = vmatprep.subr.bf16.mxu0 %v2775_v10  ;;  %v2788_v10 = vld [vmem:[%s4077_s20 + $0x1c0] ss:$16 sps:$4 sm:$0xff]  }
 0x5e4   :  { %1857 = vmatpush1.bf16.msra.mxu0 %v2773_v32  ;;  %v2794_v32 = vld [vmem:[%s4077_s20 + $0x1e0] ss:$16 sps:$4 sm:$0xff]  }
 0x5e5   :  { %1858 = vmatprep.subr.bf16.mxu0 %v2781_v34  ;;  %v2796_v34 = vld [vmem:[%s4077_s20 + $0x1e4] ss:$16 sps:$4 sm:$0xff]  }
 0x5e8   :  { %1859 = vmatpush1.bf16.msra.mxu0 %v2779_v19  ;;  %v2797_v19 = vld [vmem:[%s4077_s20 + $0x1e8] ss:$16 sps:$4 sm:$0xff]  }
 0x5e9   :  { %1860 = vmatprep.subr.bf16.mxu0 %v2787_v40  ;;  %v2799_v40 = vld [vmem:[%s4077_s20 + $0x1ec] ss:$16 sps:$4 sm:$0xff]  }
 0x5ec   :  { %1861 = vmatpush1.bf16.msra.mxu0 %v2785_v7  ;;  %v2800_v7 = vld [vmem:[%s4079_s22 + $0x40] sm:$0xff]  }
 0x5ed   :  { %1862 = vmatprep.subr.bf16.mxu0 %v2793_v63  ;;  %v2801_v63 = vld [vmem:[%s4079_s22 + $0xc0] sm:$0xff]  }
 0x5f0   :  { %1863 = vmatpush1.bf16.msra.mxu0 %v2791_v60 }
 0x5f1   :  { %1864 = vmatprep.subr.bf16.mxu0 %v2799_v40 }
 0x5f4   :  { %1865 = vmatpush1.bf16.msra.mxu0 %v2797_v19 }
 0x5f5   :  { %2496 = vmatprep.subr.bf16.mxu0 %v2801_v63  ;;  %v2412_v63 = vld [vmem:[%s4080_s23] ss:$0 sm:$0xff] }
 0x68a   :  { %v1288_v39 = vpop.f32.mrb[4].mxu0 }
 0x68b   :  { %v1289_v44 = vadd.f32 %v1288_v39, %v1167_v37  ;;  %v1290_v49 = vpop.f32.mrb[5].mxu0  ;;  %v2803_v39 = vld [vmem:[%s4079_s22 + $0x80] sm:$0xff]  }
 0x68c   :  { %v1291_v52 = vadd.f32 %v1290_v49, %v1171_v1  ;;  %v1292_v54 = vpop.f32.mrb[6].mxu0  ;;  %v2802_v1 = vld [vmem:[%s4079_s22] sm:$0xff]   ;;  %v2804_v49 = vld [vmem:[%s4079_s22 + $0x48] sm:$0xff]  }
 0x68d   :  { %v1295_v36 = vmax.f32 %v1289_v44, 0.0  ;;  %v1293_v8 = vpop.f32.mrb[7].mxu0  ;;  %v2806_v54 = vld [vmem:[%s4079_s22 + $0x8] sm:$0xff]  }
 0x68e   :  { %v1296_v11 = vmax.f32 %v1291_v52, 0.0  ;;  %v2805_v52 = vld [vmem:[%s4079_s22 + $0xc8] sm:$0xff]   ;;  %v2808_v8 = vld [vmem:[%s4079_s22 + $0x50] sm:$0xff]  }
 0x68f   :  { %v1297_v38 = vrot.slane %v1295_v36, 1  ;;  %v1301_v48 = vrot.slane %v1295_v36, 2  ;;  %v1305_v53 = vrot.slane %v1295_v36, 3 }
 0x690   :  { %v1298_v57 = vrot.slane %v1296_v11, 1  ;;  %v1302_v5 = vrot.slane %v1296_v11, 2  ;;  %v1306_v62 = vrot.slane %v1296_v11, 3 }
 0x691   :  { %v1299_v2 = vmax.f32 %v1295_v36, %v1297_v38  ;;  %v2807_v36 = vld [vmem:[%s4079_s22 + $0x88] sm:$0xff]   ;;  %v2810_v38 = vld [vmem:[%s4079_s22 + $0x10] sm:$0xff]  }
 0x692   :  { %v1300_v13 = vmax.f32 %v1296_v11, %v1298_v57  ;;  %v2809_v11 = vld [vmem:[%s4079_s22 + $0xd0] sm:$0xff]  }
 0x693   :  { %v1303_v17 = vmax.f32 %v1299_v2, %v1301_v48  ;;  %v2811_v57 = vld [vmem:[%s4079_s22 + $0x90] sm:$0xff]   ;;  %v2812_v2 = vld [vmem:[%s4079_s22 + $0x58] sm:$0xff]  }
 0x694   :  { %v1304_v23 = vmax.f32 %v1300_v13, %v1302_v5  ;;  %v2813_v48 = vld [vmem:[%s4079_s22 + $0xd8] sm:$0xff]  }
 0x695   :  { %v1307_v9 = vmax.f32 %v1303_v17, %v1305_v53  ;;  %v2814_v13 = vld [vmem:[%s4079_s22 + $0x18] sm:$0xff]   ;;  %v2816_v17 = vld [vmem:[%s4079_s22 + $0x60] sm:$0xff]  }
 0x696   :  { %v1308_v35 = vmax.f32 %v1304_v23, %v1306_v62  ;;  %v2815_v5 = vld [vmem:[%s4079_s22 + $0x98] sm:$0xff]   ;;  %v2817_v23 = vld [vmem:[%s4079_s22 + $0xe0] sm:$0xff]  }
 0x697   :  { %v2818_v62 = vld [vmem:[%s4079_s22 + $0x20] sm:$0xff]  }
 0x698   :  { %1314 = vmatprep.subr.mxu1 %v1308_v35  ;;  %v2819_v53 = vld [vmem:[%s4079_s22 + $0xa0] sm:$0xff]   ;;  %v2820_v35 = vld [vmem:[%s4079_s22 + $0x68] sm:$0xff]  }
 0x699   :  { %1315 = vmatpush1.msra.mxu1 %v1307_v9  ;;  %v2822_v9 = vld [vmem:[%s4079_s22 + $0x28] sm:$0xff]  }
 0x69a   :  { %2347 = vmatmul.mubr.msk.f32.vlgmr.msra.gmra.mrb[14].mxu1 %vm1310_vm9, %v1309_v4  ;;  %1793 = vmatprep.subr.bf16.mxu1 %v2706_v43  ;;  %v2821_v43 = vld [vmem:[%s4079_s22 + $0xe8] sm:$0xff]  }
 0x69b   :  { %1794 = vmatpush1.bf16.msra.mxu1 %v2704_v55  ;;  %v2823_v4 = vld [vmem:[%s4079_s22 + $0xa8] sm:$0xff]   ;;  %v2824_v55 = vld [vmem:[%s4079_s22 + $0x70] sm:$0xff]  }
 0x69c   :  { %1795 = vmatprep.subr.bf16.mxu1 %v2712_v21  ;;  %v2825_v21 = vld [vmem:[%s4079_s22 + $0xf0] sm:$0xff]  }
 0x69f   :  { %1796 = vmatpush1.bf16.msra.mxu1 %v2710_v24  ;;  %v2826_v24 = vld [vmem:[%s4079_s22 + $0x30] sm:$0xff]  }
 0x6a0   :  { %1797 = vmatprep.subr.bf16.mxu1 %v2718_v56  ;;  %v2827_v56 = vld [vmem:[%s4079_s22 + $0xb0] sm:$0xff]  }
 0x6a3   :  { %1798 = vmatpush1.bf16.msra.mxu1 %v2716_v15  ;;  %v2828_v15 = vld [vmem:[%s4079_s22 + $0x78] sm:$0xff]  }
 0x6a4   :  { %1799 = vmatprep.subr.bf16.mxu1 %v2724_v27  ;;  %v2829_v27 = vld [vmem:[%s4079_s22 + $0xf8] sm:$0xff]  }
 0x6a7   :  { %1800 = vmatpush1.bf16.msra.mxu1 %v2722_v41  ;;  %v2830_v41 = vld [vmem:[%s4079_s22 + $0x38] sm:$0xff]  }
 0x6a8   :  { %1801 = vmatprep.subr.bf16.mxu1 %v2730_v47  ;;  %v2831_v47 = vld [vmem:[%s4079_s22 + $0xb8] sm:$0xff]  }
 0x6ab   :  { %1802 = vmatpush1.bf16.msra.mxu1 %v2728_v33  ;;  %v1463_v33 = vsub.s32 2, %v3047_v26 }
 0x6ac   :  { %1803 = vmatprep.subr.bf16.mxu1 %v2736_v45  ;;  %v1451_v45 = vld [vmem:[%s4078_s21] sm:$0xf] }
 0x6af   :  { %1804 = vmatpush1.bf16.msra.mxu1 %v2734_v18  ;;  %v1467_v18 = vsub.s32 3, %v3047_v26 }
 0x6b0   :  { %1805 = vmatprep.subr.bf16.mxu1 %v2742_v51  ;;  %v1456_v51 = vrot.slane %v1451_v45, %v3050_v29 }
 0x6b3   :  { %1806 = vmatpush1.bf16.msra.mxu1 %v2740_v58  ;;  %v1464_v58 = vrot.slane %v1451_v45, %v1463_v33 }
 0x6b4   :  { %1807 = vmatprep.subr.bf16.mxu1 %v2748_v28  ;;  %v1460_v28 = vrot.slane %v1451_v45, %v1170_v46 }
 0x6b7   :  { %1808 = vmatpush1.bf16.msra.mxu1 %v2746_v31  ;;  %v1468_v31 = vrot.slane %v1451_v45, %v1467_v18 }
 0x6b8   :  { %1809 = vmatprep.subr.bf16.mxu1 %v2754_v30 }
 0x6bb   :  { %1810 = vmatpush1.bf16.msra.mxu1 %v2752_v12 }
 0x6bc   :  { %1811 = vmatprep.subr.bf16.mxu1 %v2760_v14 }
 0x6bf   :  { %1812 = vmatpush1.bf16.msra.mxu1 %v2758_v42 }
 0x6c0   :  { %1813 = vmatprep.subr.bf16.mxu1 %v2766_v50 }
 0x6c3   :  { %1814 = vmatpush1.bf16.msra.mxu1 %v2764_v20 }
 0x6c4   :  { %1815 = vmatprep.subr.bf16.mxu1 %v2772_v25 }
 0x6c7   :  { %1816 = vmatpush1.bf16.msra.mxu1 %v2770_v16 }
 0x6c8   :  { %1817 = vmatprep.subr.bf16.mxu1 %v2778_v6 }
 0x6cb   :  { %1818 = vmatpush1.bf16.msra.mxu1 %v2776_v0 }
 0x6cc   :  { %1819 = vmatprep.subr.bf16.mxu1 %v2784_v59 }
 0x6cf   :  { %1820 = vmatpush1.bf16.msra.mxu1 %v2782_v22 }
 0x6d0   :  { %1821 = vmatprep.subr.bf16.mxu1 %v2790_v3 }
 0x6d3   :  { %1822 = vmatpush1.bf16.msra.mxu1 %v2788_v10 }
 0x6d4   :  { %1823 = vmatprep.subr.bf16.mxu1 %v2796_v34 }
 0x6d7   :  { %1824 = vmatpush1.bf16.msra.mxu1 %v2794_v32 }
 0x6d8   :  { %2474 = vmatprep.subr.bf16.mxu1 %v2800_v7 }
 0x76d   :  { %v1380_v60 = vpop.f32.mrb[14].mxu1 }
 0x76e   :  { %v1382_v61 = vpop.f32.mrb[15].mxu1  ;;  %v1385_v44 = vpack.c.bf16 %v1380_v60, %v1380_v60 }
 0x76f   :  { %v1386_v37 = vpack.c.bf16 %v1382_v61, %v1382_v61 }
 0x771   :  { %1825 = vmatprep.mubr.bf16.mxu1 %v1386_v37  ;;  %1866 = vmatprep.mubr.bf16.mxu0 %v1386_v37 }
 0x772   :  { %1826 = vmatmul.mubr.bf16.vlgmr.msra.gmra.mrb[16].mxu1 %v1385_v44  ;;  %1867 = vmatmul.mubr.bf16.vlgmr.msra.gmra.mrb[8].mxu0 %v1385_v44 }
 0x773   :  { %2475 = vmatpush3.bf16.msra.mxu1 %v2802_v1  ;;  %2497 = vmatpush3.bf16.msra.mxu0 %v2803_v39 }
 0x774   :  { %2476 = vmatprep.subr.bf16.mxu1 %v2804_v49  ;;  %2498 = vmatprep.subr.bf16.mxu0 %v2805_v52 }
 0x777   :  { %2477 = vmatpush3.bf16.msra.mxu1 %v2806_v54  ;;  %2499 = vmatpush3.bf16.msra.mxu0 %v2807_v36 }
 0x778   :  { %2478 = vmatprep.subr.bf16.mxu1 %v2808_v8  ;;  %2500 = vmatprep.subr.bf16.mxu0 %v2809_v11 }
 0x77b   :  { %2479 = vmatpush3.bf16.msra.mxu1 %v2810_v38  ;;  %2501 = vmatpush3.bf16.msra.mxu0 %v2811_v57 }
 0x77c   :  { %2480 = vmatprep.subr.bf16.mxu1 %v2812_v2  ;;  %2502 = vmatprep.subr.bf16.mxu0 %v2813_v48 }
 0x77f   :  { %2481 = vmatpush3.bf16.msra.mxu1 %v2814_v13  ;;  %2503 = vmatpush3.bf16.msra.mxu0 %v2815_v5 }
 0x780   :  { %2482 = vmatprep.subr.bf16.mxu1 %v2816_v17  ;;  %2504 = vmatprep.subr.bf16.mxu0 %v2817_v23 }
 0x783   :  { %2483 = vmatpush3.bf16.msra.mxu1 %v2818_v62  ;;  %2505 = vmatpush3.bf16.msra.mxu0 %v2819_v53 }
 0x784   :  { %2484 = vmatprep.subr.bf16.mxu1 %v2820_v35  ;;  %2506 = vmatprep.subr.bf16.mxu0 %v2821_v43 }
 0x787   :  { %2485 = vmatpush3.bf16.msra.mxu1 %v2822_v9  ;;  %2507 = vmatpush3.bf16.msra.mxu0 %v2823_v4 }
 0x788   :  { %2486 = vmatprep.subr.bf16.mxu1 %v2824_v55  ;;  %2508 = vmatprep.subr.bf16.mxu0 %v2825_v21 }
 0x78b   :  { %2487 = vmatpush3.bf16.msra.mxu1 %v2826_v24  ;;  %2509 = vmatpush3.bf16.msra.mxu0 %v2827_v56 }
 0x78c   :  { %2488 = vmatprep.subr.bf16.mxu1 %v2828_v15  ;;  %2510 = vmatprep.subr.bf16.mxu0 %v2829_v27 }
 0x78f   :  { %2489 = vmatpush3.bf16.msra.mxu1 %v2830_v41  ;;  %2511 = vmatpush3.bf16.msra.mxu0 %v2831_v47 }
 0x845   :  { %v1827_v30 = vpop.f32.mrb[16].mxu1  ;;  %v1868_v12 = vpop.f32.mrb[8].mxu0 }
 0x846   :  { %v1828_v14 = vadd.f32 %v1827_v30, %v1456_v51  ;;  %v1869_v42 = vadd.f32 %v1868_v12, %v1464_v58  ;;  %v1829_v50 = vpop.f32.mrb[17].mxu1  ;;  %v1870_v20 = vpop.f32.mrb[9].mxu0 }
 0x847   :  { %v1830_v25 = vadd.f32 %v1829_v50, %v1460_v28  ;;  %v1871_v16 = vadd.f32 %v1870_v20, %v1468_v31  ;;  %v1831_v6 = vpop.f32.mrb[18].mxu1  ;;  %v1872_v0 = vpop.f32.mrb[10].mxu0 }
 0x848   :  { %v1875_v59 = vmax.f32 %v1828_v14, 0.0  ;;  %v1877_v22 = vmax.f32 %v1869_v42, 0.0  ;;  %v1832_v3 = vpop.f32.mrb[19].mxu1  ;;  %v1873_v10 = vpop.f32.mrb[11].mxu0 }
 0x849   :  { %v1876_v29 = vmax.f32 %v1830_v25, 0.0  ;;  %v1878_v32 = vmax.f32 %v1871_v16, 0.0 }
 0x84a   :  { %v1879_v46 = vpack.c.bf16 %v1875_v59, %v1875_v59  ;;  %v1881_v19 = vpack.c.bf16 %v1877_v22, %v1877_v22 }
 0x84b   :  { %v1880_v34 = vpack.c.bf16 %v1876_v29, %v1876_v29  ;;  %v1882_v26 = vpack.c.bf16 %v1878_v32, %v1878_v32 }
 0x84d   :  { %2178 = vmatprep.mubr.bf16.mxu1 %v1880_v34  ;;  %2218 = vmatprep.mubr.bf16.mxu0 %v1882_v26 }
 0x84e   :  { %2179 = vmatmul.mubr.bf16.vlgmr.msra.gmra.mrb[20].mxu1 %v1879_v46  ;;  %2219 = vmatmul.mubr.bf16.vlgmr.msra.gmra.mrb[12].mxu0 %v1881_v19 }
 0x921   :  { %v2490_v40 = vpop.f32.mrb[20].mxu1  ;;  %v2512_v7 = vpop.f32.mrb[12].mxu0 }
 0x922   :  { %v2491_v60 = vpop.f32.mrb[21].mxu1  ;;  %v2513_v61 = vpop.f32.mrb[13].mxu0 }
 0x923   :  { %v2492_v37 = vadd.f32 %v2491_v60, %v2490_v40  ;;  %v2514_v1 = vadd.f32 %v2513_v61, %v2512_v7  ;;  %v2493_v39 = vpop.f32.mrb[22].mxu1  ;;  %v2515_v44 = vpop.f32.mrb[14].mxu0 }
 0x924   :  { %v2494_v49 = vpop.f32.mrb[23].mxu1  ;;  %v2516_v52 = vpop.f32.mrb[15].mxu0 }
 0x925   :  { %v2181_v54 = vadd.f32 %v2492_v37, %v2412_v63 }
 0x927   :  { %v2221_v36 = vadd.f32 %v2514_v1, %v2181_v54 }
 0x929   :  { %2226 = vst [vmem:[#allocation3] sm:$0x3] %v2221_v36 }
 0x92a   :  { %2843 = shalt.err (!%p2840_p4)
}
 0x92b   :  { %s2844_s29 = scalar_lea.hbm %s4081_s24, 32 }
 0x92c   :  { %p2845_p5 = scmp.ne.s32.totalorder %s4081_s24, %s2844_s29  ;;  %p2848_p6 = scmp.lt.u32.totalorder %s2844_s29, %s4081_s24 }
 0x92e   :  { %p2850_p7 = pnand %p2848_p6, %p2845_p5 }
 0x930   :  { %2853 = shalt.err (!%p2850_p7)
}
 0x931   :  { %2236 = dma.vmem_to_hbm [thread:$0]  %s2234_s14, 32, %s4081_s24, [#allocation4]  }
 0x932   :  { %2854 = dma.done.wait [#allocation4], 32  }
 0x933   :  { %2855 = vsyncadd [#allocation4], 4294967264 }
 0x934   :  { %2240 = vsyncpa [#allocation4], 1 }

</bundles_post_ra>
